<compile_context>
chip_gen: v7x
topology: tpu7x:2x2x1
jax: 0.10.0
libtpu: 0.0.40
codegen_flags: <defaults>
</compile_context>

<pallas_src>
import jax
import jax.numpy as jnp
from jax.experimental import pallas as pl
from jax.experimental.pallas import tpu as pltpu

LRELU_SLOPE = 0.1

# ----------------------------------------------------------------------------
# Representative generator config (same as the original synthetic setup).
# ----------------------------------------------------------------------------
NUM_CODES = 100       # unit-code dictionary size
CODE_DIM = 32         # code embedding dim
NUM_SPKR = 4
SPKR_DIM = 16
CH_PRE = 64           # upsample_initial_channel
CH_UP = 32            # channels after the single upsample stage
C_IN0 = CODE_DIM + SPKR_DIM   # 48
POST_ROWS = 8         # conv_post C_out=1 padded to one 8-sublane tile
HALO = 8              # guaranteed zero columns on the right of every block so
                      # roll-based conv halos (max pad = 3) never wrap valid data


# ----------------------------------------------------------------------------
# In-kernel helpers
# ----------------------------------------------------------------------------
def _leaky(x):
    return jnp.where(x >= 0, x, LRELU_SLOPE * x)


def _shift_cols(x, s):
    """y[:, t] = x[:, t + s]  (static shift along the lane/time axis).

    Relies on x being exactly zero in its right padding columns (guaranteed by
    HALO + _mask_cols), so the wrap-around of a right rotation injects zeros
    (left halo), and the wrap-around of a left rotation only lands in columns
    that are masked right after the conv (right halo)."""
    if s == 0:
        return x
    w = x.shape[-1]
    return pltpu.roll(x, shift=(-s) % w, axis=1)


def _mask_cols(y, t_valid):
    """Zero every column >= t_valid (keeps the padding region exactly zero)."""
    col = jax.lax.broadcasted_iota(jnp.int32, y.shape, 1)
    return jnp.where(col < t_valid, y, 0.0)


def _conv1d_same(x, w2d, b, *, K, dil, t_valid, pre_act=False, post_act=None,
                 residual=None):
    """'same'-padded Conv1d as a single im2col matmul on the MXU.

    x    : [C_in, W] f32, zero outside columns [0, t_valid)
    w2d  : [C_out, K*C_in] bf16, tap-major im2col layout
    b    : [C_out, 1] f32
    """
    if pre_act:
        x = _leaky(x)                      # LeakyReLU(0) == 0 -> padding stays 0
    pad = dil * (K - 1) // 2
    taps = [_shift_cols(x, k * dil - pad) for k in range(K)]
    xcat = jnp.concatenate(taps, axis=0).astype(jnp.bfloat16)     # [K*C_in, W]
    y = jnp.dot(w2d, xcat, preferred_element_type=jnp.float32) + b
    if post_act == "tanh":
        y = jnp.tanh(y)
    y = _mask_cols(y, t_valid)
    if residual is not None:
        y = y + residual
    return y


# ----------------------------------------------------------------------------
# Fused generator kernel (single pallas_call, single block, all in VMEM)
# ----------------------------------------------------------------------------
def _make_generator_kernel(T):
    def kernel(x0_ref, wpre_ref, bpre_ref, wue_ref, wuo_ref, bups_ref,
               wr1_ref, br1_ref, wr2_ref, br2_ref, wpost_ref, bpost_ref,
               o_ref):
        tb = x0_ref.shape[1]              # lane-dense time block (mult. of 128)
        tb2 = 2 * tb
        t_up = 2 * T

        x0 = x0_ref[...]                  # [48, TB] f32, zero beyond column T

        # conv_pre: Conv1d(48 -> 64, k=7, pad=3)   -> one [64,336]x[336,TB] dot
        h = _conv1d_same(x0, wpre_ref[...], bpre_ref[...],
                         K=7, dil=1, t_valid=T)

        # LeakyReLU -> ConvTranspose1d(64 -> 32, k=4, stride=2, pad=1)
        # polyphase:   even out col m:  W1^T x[m]   + W3^T x[m-1]
        #              odd  out col m:  W0^T x[m+1] + W2^T x[m]
        # One 128-deep dot per phase; no zero-stuffed columns reach the MXU.
        hl = _leaky(h)                                               # [64, TB]
        even_in = jnp.concatenate([hl, _shift_cols(hl, -1)],
                                  axis=0).astype(jnp.bfloat16)       # [128, TB]
        odd_in = jnp.concatenate([_shift_cols(hl, +1), hl],
                                 axis=0).astype(jnp.bfloat16)        # [128, TB]
        even = jnp.dot(wue_ref[...], even_in,
                       preferred_element_type=jnp.float32) + bups_ref[...]
        odd = jnp.dot(wuo_ref[...], odd_in,
                      preferred_element_type=jnp.float32) + bups_ref[...]

        # Interleave phases onto the 2x time axis with 0/1 scatter matmuls
        # (robustly lowerable alternative to a lane-interleaving reshape; cost
        # is negligible: [32,TB]x[TB,2TB]).
        r = jax.lax.broadcasted_iota(jnp.int32, (tb, tb2), 0)
        c = jax.lax.broadcasted_iota(jnp.int32, (tb, tb2), 1)
        s_even = (c == 2 * r).astype(jnp.float32)                    # [TB, 2TB]
        s_odd = (c == 2 * r + 1).astype(jnp.float32)
        up = (jnp.dot(even, s_even, preferred_element_type=jnp.float32) +
              jnp.dot(odd, s_odd, preferred_element_type=jnp.float32))
        up = _mask_cols(up, t_up)                                    # [32, 2TB]

        # ResBlock: xt = c2(lrelu(c1(lrelu(x)))); x = x + xt  (residual fused)
        xt = _conv1d_same(up, wr1_ref[...], br1_ref[...],
                          K=3, dil=3, t_valid=t_up, pre_act=True)
        x = _conv1d_same(xt, wr2_ref[...], br2_ref[...],
                         K=3, dil=1, t_valid=t_up, pre_act=True, residual=up)

        # LeakyReLU -> conv_post (C_out=1 padded to 8 sublanes) -> tanh
        o_ref[...] = _conv1d_same(x, wpost_ref[...], bpost_ref[...],
                                  K=7, dil=1, t_valid=t_up,
                                  pre_act=True, post_act="tanh")     # [8, 2TB]

    return kernel


def _run_generator(packed, x0, T):
    tb = x0.shape[1]
    vmem_specs = [pl.BlockSpec(memory_space=pltpu.MemorySpace.VMEM)
                  for _ in range(12)]
    return pl.pallas_call(
        _make_generator_kernel(T),
        out_shape=jax.ShapeDtypeStruct((POST_ROWS, 2 * tb), jnp.float32),
        in_specs=vmem_specs,
        out_specs=pl.BlockSpec(memory_space=pltpu.MemorySpace.VMEM),
        compiler_params=pltpu.CompilerParams(
            vmem_limit_bytes=32 * 1024 * 1024),
    )(x0,
      packed["w_pre"], packed["b_pre"],
      packed["w_up_even"], packed["w_up_odd"], packed["b_ups"],
      packed["w_r1"], packed["b_r1"],
      packed["w_r2"], packed["b_r2"],
      packed["w_post"], packed["b_post"])


# ----------------------------------------------------------------------------
# Parameters (checkpoint layout) + one-time packing into kernel layout
# ----------------------------------------------------------------------------
def init_params(key):
    ks = jax.random.split(key, 12)

    def w(k, shape, scale=0.05):
        return (scale * jax.random.normal(k, shape)).astype(jnp.float32)

    return {
        "code_emb": w(ks[0], (NUM_CODES, CODE_DIM), 1.0),
        "spkr_emb": w(ks[1], (NUM_SPKR, SPKR_DIM), 1.0),
        # conv_pre: Conv1d(48 -> 64, k=7, pad=3)      weight as [K, Cout, Cin]
        "w_pre": w(ks[2], (7, CH_PRE, C_IN0)),
        "b_pre": w(ks[3], (CH_PRE,)),
        # upsample: ConvTranspose1d(64 -> 32, k=4, stride=2, pad=1)
        #           weight in PyTorch layout [Cin, Cout, K]
        "w_ups": w(ks[4], (CH_PRE, CH_UP, 4)),
        "b_ups": w(ks[5], (CH_UP,)),
        # ResBlock convs: Conv1d(32 -> 32, k=3, dil=3 then dil=1)
        "w_r1": w(ks[6], (3, CH_UP, CH_UP)),
        "b_r1": w(ks[7], (CH_UP,)),
        "w_r2": w(ks[8], (3, CH_UP, CH_UP)),
        "b_r2": w(ks[9], (CH_UP,)),
        # conv_post: Conv1d(32 -> 1, k=7, pad=3)
        "w_post": w(ks[10], (7, 1, CH_UP)),
        "b_post": w(ks[11], (1,)),
    }


def _im2col_w(w):
    """[K, C_out, C_in] -> [C_out, K*C_in] (tap-major columns), bf16 MXU input."""
    K, co, ci = w.shape
    return jnp.transpose(w, (1, 0, 2)).reshape(co, K * ci).astype(jnp.bfloat16)


def pack_generator_weights(params):
    """One-time conversion of checkpoint-layout weights into kernel layout."""
    wt = params["w_ups"]                                   # [C_in, C_out, K]
    w_up_even = jnp.concatenate([wt[:, :, 1].T, wt[:, :, 3].T], axis=1)
    w_up_odd = jnp.concatenate([wt[:, :, 0].T, wt[:, :, 2].T], axis=1)

    # conv_post: pad the single output channel to a full 8-sublane tile.
    w_post8 = jnp.zeros((7, POST_ROWS, CH_UP), jnp.float32)
    w_post8 = w_post8.at[:, 0, :].set(params["w_post"][:, 0, :])
    b_post8 = jnp.zeros((POST_ROWS,), jnp.float32).at[0].set(params["b_post"][0])

    def bias(b):
        return b.reshape(-1, 1).astype(jnp.float32)

    return {
        "code_emb": params["code_emb"].astype(jnp.float32),
        "spkr_emb": params["spkr_emb"].astype(jnp.float32),
        "w_pre": _im2col_w(params["w_pre"]), "b_pre": bias(params["b_pre"]),
        "w_up_even": w_up_even.astype(jnp.bfloat16),
        "w_up_odd": w_up_odd.astype(jnp.bfloat16),
        "b_ups": bias(params["b_ups"]),
        "w_r1": _im2col_w(params["w_r1"]), "b_r1": bias(params["b_r1"]),
        "w_r2": _im2col_w(params["w_r2"]), "b_r2": bias(params["b_r2"]),
        "w_post": _im2col_w(w_post8), "b_post": bias(b_post8),
    }


# ----------------------------------------------------------------------------
# Vocoder.forward
# ----------------------------------------------------------------------------
def vocoder_forward(packed, codes, speaker_id):
    """Mirrors Vocoder.forward: codes -> LongTensor [1,T], spkr -> [1,1],
    run generator, squeeze() -> waveform [2*T]."""
    codes = jnp.asarray(codes, jnp.int32)                  # inp['code'].view(1,-1)
    spkr = jnp.asarray(speaker_id, jnp.int32)              # inp['spkr'].view(1,1)
    T = codes.shape[0]
    # lane-dense time block with a guaranteed right halo of zero columns so the
    # roll-based conv halos never wrap valid data (covers T == multiple of 128).
    tb = -(-(T + HALO) // 128) * 128

    # Embedding gathers stay in plain JAX (glue); everything after is one kernel.
    code_e = packed["code_emb"][codes]                     # [T, CODE_DIM]
    spkr_e = packed["spkr_emb"][spkr]                      # [SPKR_DIM]
    x = jnp.concatenate(
        [code_e.T, jnp.broadcast_to(spkr_e[:, None], (SPKR_DIM, T))], axis=0)
    x0 = jnp.pad(x.astype(jnp.float32), ((0, 0), (0, tb - T)))   # [48, TB]

    wav = _run_generator(packed, x0, T)                    # [8, 2*TB]
    return wav[0, : 2 * T]                                 # .squeeze() -> [2T]


# ----------------------------------------------------------------------------
# Pure-JAX f32 reference (mirrors the PyTorch generator layer by layer)
# ----------------------------------------------------------------------------
def _conv1d_ref(x, w, b, *, pad, dil=1):
    K, c_out, _ = w.shape
    t_out = x.shape[1] + 2 * pad - dil * (K - 1)
    xp = jnp.pad(x, ((0, 0), (pad, pad)))
    acc = jnp.zeros((c_out, t_out), jnp.float32)
    for k in range(K):
        acc = acc + w[k] @ xp[:, k * dil: k * dil + t_out]
    return acc + b[:, None]


def _convT1d_ref(x, w_t, b, *, stride, pad):
    c_in, t = x.shape
    _, _, K = w_t.shape
    x_up = jnp.zeros((c_in, (t - 1) * stride + 1), x.dtype).at[:, ::stride].set(x)
    w_conv = jnp.transpose(w_t[:, :, ::-1], (2, 1, 0))
    return _conv1d_ref(x_up, w_conv, b, pad=K - 1 - pad)


def vocoder_forward_ref(params, codes, speaker_id):
    codes = jnp.asarray(codes, jnp.int32)
    t = codes.shape[0]
    code_e = params["code_emb"][codes]
    spkr_e = params["spkr_emb"][jnp.asarray(speaker_id, jnp.int32)]
    x = jnp.concatenate(
        [code_e.T, jnp.broadcast_to(spkr_e[:, None], (SPKR_DIM, t))], axis=0)
    x = _conv1d_ref(x, params["w_pre"], params["b_pre"], pad=3)
    x = _convT1d_ref(_leaky(x), params["w_ups"], params["b_ups"], stride=2, pad=1)
    xt = _conv1d_ref(_leaky(x), params["w_r1"], params["b_r1"], pad=3, dil=3)
    x = x + _conv1d_ref(_leaky(xt), params["w_r2"], params["b_r2"], pad=1, dil=1)
    x = jnp.tanh(_conv1d_ref(_leaky(x), params["w_post"], params["b_post"], pad=3))
    return x.reshape(-1)


if __name__ == "__main__":
    key = jax.random.PRNGKey(0)
    k_param, k_codes = jax.random.split(key)

    params = init_params(k_param)
    packed = pack_generator_weights(params)                # one-time packing
    codes = jax.random.randint(k_codes, (16,), 0, NUM_CODES)   # 16 unit codes
    speaker_id = 2

    fwd = jax.jit(vocoder_forward)
    wav = jax.block_until_ready(fwd(packed, codes, speaker_id))

    assert wav.shape == (32,), wav.shape                   # 2x upsample of 16 codes
    assert wav.dtype == jnp.float32
    assert bool(jnp.all(jnp.isfinite(wav)))
    assert bool(jnp.all(jnp.abs(wav) <= 1.0))              # tanh output range

    # Cross-check the fused Pallas kernel against the plain-JAX f32 reference
    # (tolerance covers the bf16 MXU inputs).
    ref = vocoder_forward_ref(params, codes, speaker_id)
    max_err = float(jnp.max(jnp.abs(wav - ref)))
    assert max_err < 5e-2, max_err

    print("KERNEL_OK")
</pallas_src>

<mosaic_0001>
module attributes {stable_mosaic.version = 11 : i64} {
  func.func @kernel(%arg0: memref<48x128xf32, #tpu.memory_space<vmem>>, %arg1: memref<64x336xbf16, #tpu.memory_space<vmem>>, %arg2: memref<64x1xf32, #tpu.memory_space<vmem>>, %arg3: memref<32x128xbf16, #tpu.memory_space<vmem>>, %arg4: memref<32x128xbf16, #tpu.memory_space<vmem>>, %arg5: memref<32x1xf32, #tpu.memory_space<vmem>>, %arg6: memref<32x96xbf16, #tpu.memory_space<vmem>>, %arg7: memref<32x1xf32, #tpu.memory_space<vmem>>, %arg8: memref<32x96xbf16, #tpu.memory_space<vmem>>, %arg9: memref<32x1xf32, #tpu.memory_space<vmem>>, %arg10: memref<8x224xbf16, #tpu.memory_space<vmem>>, %arg11: memref<8x1xf32, #tpu.memory_space<vmem>>, %arg12: memref<8x256xf32, #tpu.memory_space<vmem>>) attributes {dimension_semantics = [], scalar_prefetch = 0 : i64, scratch_operands = 0 : i64, tpu.core_type = #tpu.core_type<tc>} {
    %c0 = arith.constant 0 : index
    %c0_0 = arith.constant 0 : index
    %0 = vector.load %arg0[%c0, %c0_0] : memref<48x128xf32, #tpu.memory_space<vmem>>, vector<48x128xf32>
    %c0_1 = arith.constant 0 : index
    %c0_2 = arith.constant 0 : index
    %1 = vector.load %arg1[%c0_1, %c0_2] : memref<64x336xbf16, #tpu.memory_space<vmem>>, vector<64x336xbf16>
    %c0_3 = arith.constant 0 : index
    %c0_4 = arith.constant 0 : index
    %2 = vector.load %arg2[%c0_3, %c0_4] : memref<64x1xf32, #tpu.memory_space<vmem>>, vector<64x1xf32>
    %c3_i32 = arith.constant 3 : i32
    %3 = tpu.dynamic_rotate %0 by %c3_i32 dim 1 : vector<48x128xf32>, i32 -> vector<48x128xf32>
    %c2_i32 = arith.constant 2 : i32
    %4 = tpu.dynamic_rotate %0 by %c2_i32 dim 1 : vector<48x128xf32>, i32 -> vector<48x128xf32>
    %c1_i32 = arith.constant 1 : i32
    %5 = tpu.dynamic_rotate %0 by %c1_i32 dim 1 : vector<48x128xf32>, i32 -> vector<48x128xf32>
    %c127_i32 = arith.constant 127 : i32
    %6 = tpu.dynamic_rotate %0 by %c127_i32 dim 1 : vector<48x128xf32>, i32 -> vector<48x128xf32>
    %c126_i32 = arith.constant 126 : i32
    %7 = tpu.dynamic_rotate %0 by %c126_i32 dim 1 : vector<48x128xf32>, i32 -> vector<48x128xf32>
    %c125_i32 = arith.constant 125 : i32
    %8 = tpu.dynamic_rotate %0 by %c125_i32 dim 1 : vector<48x128xf32>, i32 -> vector<48x128xf32>
    %9 = tpu.concatenate %3, %4, %5, %0, %6, %7, %8 in 0 : vector<48x128xf32>, vector<48x128xf32>, vector<48x128xf32>, vector<48x128xf32>, vector<48x128xf32>, vector<48x128xf32>, vector<48x128xf32> -> vector<336x128xf32>
    %10 = arith.truncf %9 : vector<336x128xf32> to vector<336x128xbf16>
    %cst = arith.constant dense<0.000000e+00> : vector<64x128xf32>
    %11 = tpu.matmul %1, %10, %cst {dimension_numbers = #tpu.dot_dimension_numbers<[1], [0], [0], [1], [0, 0, 1, 1], [], []>} : vector<64x336xbf16>, vector<336x128xbf16>, vector<64x128xf32> -> vector<64x128xf32>
    %12 = vector.broadcast %2 : vector<64x1xf32> to vector<64x128xf32>
    %13 = arith.addf %11, %12 : vector<64x128xf32>
    %14 = tpu.iota {dimensions = array<i32: 1>} : vector<64x128xi32>
    %c16_i32 = arith.constant 16 : i32
    %15 = vector.broadcast %c16_i32 : i32 to vector<64x128xi32>
    %16 = arith.cmpi slt, %14, %15 : vector<64x128xi32>
    %cst_5 = arith.constant 0.000000e+00 : f32
    %17 = vector.broadcast %cst_5 : f32 to vector<64x128xf32>
    %18 = arith.select %16, %13, %17 : vector<64x128xi1>, vector<64x128xf32>
    %cst_6 = arith.constant 0.000000e+00 : f32
    %19 = vector.broadcast %cst_6 : f32 to vector<64x128xf32>
    %20 = arith.cmpf oge, %18, %19 : vector<64x128xf32>
    %cst_7 = arith.constant 1.000000e-01 : f32
    %21 = vector.broadcast %cst_7 : f32 to vector<64x128xf32>
    %22 = arith.mulf %21, %18 : vector<64x128xf32>
    %23 = arith.select %20, %18, %22 : vector<64x128xi1>, vector<64x128xf32>
    %c1_i32_8 = arith.constant 1 : i32
    %24 = tpu.dynamic_rotate %23 by %c1_i32_8 dim 1 : vector<64x128xf32>, i32 -> vector<64x128xf32>
    %25 = tpu.concatenate %23, %24 in 0 : vector<64x128xf32>, vector<64x128xf32> -> vector<128x128xf32>
    %26 = arith.truncf %25 : vector<128x128xf32> to vector<128x128xbf16>
    %c127_i32_9 = arith.constant 127 : i32
    %27 = tpu.dynamic_rotate %23 by %c127_i32_9 dim 1 : vector<64x128xf32>, i32 -> vector<64x128xf32>
    %28 = tpu.concatenate %27, %23 in 0 : vector<64x128xf32>, vector<64x128xf32> -> vector<128x128xf32>
    %29 = arith.truncf %28 : vector<128x128xf32> to vector<128x128xbf16>
    %c0_10 = arith.constant 0 : index
    %c0_11 = arith.constant 0 : index
    %30 = vector.load %arg3[%c0_10, %c0_11] : memref<32x128xbf16, #tpu.memory_space<vmem>>, vector<32x128xbf16>
    %cst_12 = arith.constant dense<0.000000e+00> : vector<32x128xf32>
    %31 = tpu.matmul %30, %26, %cst_12 {dimension_numbers = #tpu.dot_dimension_numbers<[1], [0], [0], [1], [0, 0, 1, 1], [], []>} : vector<32x128xbf16>, vector<128x128xbf16>, vector<32x128xf32> -> vector<32x128xf32>
    %c0_13 = arith.constant 0 : index
    %c0_14 = arith.constant 0 : index
    %32 = vector.load %arg5[%c0_13, %c0_14] : memref<32x1xf32, #tpu.memory_space<vmem>>, vector<32x1xf32>
    %33 = vector.broadcast %32 : vector<32x1xf32> to vector<32x128xf32>
    %34 = arith.addf %31, %33 : vector<32x128xf32>
    %c0_15 = arith.constant 0 : index
    %c0_16 = arith.constant 0 : index
    %35 = vector.load %arg4[%c0_15, %c0_16] : memref<32x128xbf16, #tpu.memory_space<vmem>>, vector<32x128xbf16>
    %cst_17 = arith.constant dense<0.000000e+00> : vector<32x128xf32>
    %36 = tpu.matmul %35, %29, %cst_17 {dimension_numbers = #tpu.dot_dimension_numbers<[1], [0], [0], [1], [0, 0, 1, 1], [], []>} : vector<32x128xbf16>, vector<128x128xbf16>, vector<32x128xf32> -> vector<32x128xf32>
    %c0_18 = arith.constant 0 : index
    %c0_19 = arith.constant 0 : index
    %37 = vector.load %arg5[%c0_18, %c0_19] : memref<32x1xf32, #tpu.memory_space<vmem>>, vector<32x1xf32>
    %38 = vector.broadcast %37 : vector<32x1xf32> to vector<32x128xf32>
    %39 = arith.addf %36, %38 : vector<32x128xf32>
    %40 = tpu.iota {dimensions = array<i32: 0>} : vector<128x256xi32>
    %41 = tpu.iota {dimensions = array<i32: 1>} : vector<128x256xi32>
    %c2_i32_20 = arith.constant 2 : i32
    %42 = vector.broadcast %c2_i32_20 : i32 to vector<128x256xi32>
    %43 = arith.muli %42, %40 : vector<128x256xi32>
    %44 = arith.cmpi eq, %41, %43 : vector<128x256xi32>
    %45 = arith.extui %44 : vector<128x256xi1> to vector<128x256xi32>
    %46 = arith.sitofp %45 : vector<128x256xi32> to vector<128x256xf32>
    %c2_i32_21 = arith.constant 2 : i32
    %47 = vector.broadcast %c2_i32_21 : i32 to vector<128x256xi32>
    %48 = arith.muli %47, %40 : vector<128x256xi32>
    %c1_i32_22 = arith.constant 1 : i32
    %49 = vector.broadcast %c1_i32_22 : i32 to vector<128x256xi32>
    %50 = arith.addi %48, %49 : vector<128x256xi32>
    %51 = arith.cmpi eq, %41, %50 : vector<128x256xi32>
    %52 = arith.extui %51 : vector<128x256xi1> to vector<128x256xi32>
    %53 = arith.sitofp %52 : vector<128x256xi32> to vector<128x256xf32>
    %cst_23 = arith.constant dense<0.000000e+00> : vector<32x256xf32>
    %54 = tpu.matmul %34, %46, %cst_23 {dimension_numbers = #tpu.dot_dimension_numbers<[1], [0], [0], [1], [0, 0, 1, 1], [], []>} : vector<32x128xf32>, vector<128x256xf32>, vector<32x256xf32> -> vector<32x256xf32>
    %cst_24 = arith.constant dense<0.000000e+00> : vector<32x256xf32>
    %55 = tpu.matmul %39, %53, %cst_24 {dimension_numbers = #tpu.dot_dimension_numbers<[1], [0], [0], [1], [0, 0, 1, 1], [], []>} : vector<32x128xf32>, vector<128x256xf32>, vector<32x256xf32> -> vector<32x256xf32>
    %56 = arith.addf %54, %55 : vector<32x256xf32>
    %57 = tpu.iota {dimensions = array<i32: 1>} : vector<32x256xi32>
    %c32_i32 = arith.constant 32 : i32
    %58 = vector.broadcast %c32_i32 : i32 to vector<32x256xi32>
    %59 = arith.cmpi slt, %57, %58 : vector<32x256xi32>
    %cst_25 = arith.constant 0.000000e+00 : f32
    %60 = vector.broadcast %cst_25 : f32 to vector<32x256xf32>
    %61 = arith.select %59, %56, %60 : vector<32x256xi1>, vector<32x256xf32>
    %c0_26 = arith.constant 0 : index
    %c0_27 = arith.constant 0 : index
    %62 = vector.load %arg6[%c0_26, %c0_27] : memref<32x96xbf16, #tpu.memory_space<vmem>>, vector<32x96xbf16>
    %c0_28 = arith.constant 0 : index
    %c0_29 = arith.constant 0 : index
    %63 = vector.load %arg7[%c0_28, %c0_29] : memref<32x1xf32, #tpu.memory_space<vmem>>, vector<32x1xf32>
    %cst_30 = arith.constant 0.000000e+00 : f32
    %64 = vector.broadcast %cst_30 : f32 to vector<32x256xf32>
    %65 = arith.cmpf oge, %61, %64 : vector<32x256xf32>
    %cst_31 = arith.constant 1.000000e-01 : f32
    %66 = vector.broadcast %cst_31 : f32 to vector<32x256xf32>
    %67 = arith.mulf %66, %61 : vector<32x256xf32>
    %68 = arith.select %65, %61, %67 : vector<32x256xi1>, vector<32x256xf32>
    %c3_i32_32 = arith.constant 3 : i32
    %69 = tpu.dynamic_rotate %68 by %c3_i32_32 dim 1 : vector<32x256xf32>, i32 -> vector<32x256xf32>
    %c253_i32 = arith.constant 253 : i32
    %70 = tpu.dynamic_rotate %68 by %c253_i32 dim 1 : vector<32x256xf32>, i32 -> vector<32x256xf32>
    %71 = tpu.concatenate %69, %68, %70 in 0 : vector<32x256xf32>, vector<32x256xf32>, vector<32x256xf32> -> vector<96x256xf32>
    %72 = arith.truncf %71 : vector<96x256xf32> to vector<96x256xbf16>
    %cst_33 = arith.constant dense<0.000000e+00> : vector<32x256xf32>
    %73 = tpu.matmul %62, %72, %cst_33 {dimension_numbers = #tpu.dot_dimension_numbers<[1], [0], [0], [1], [0, 0, 1, 1], [], []>} : vector<32x96xbf16>, vector<96x256xbf16>, vector<32x256xf32> -> vector<32x256xf32>
    %74 = vector.broadcast %63 : vector<32x1xf32> to vector<32x256xf32>
    %75 = arith.addf %73, %74 : vector<32x256xf32>
    %76 = tpu.iota {dimensions = array<i32: 1>} : vector<32x256xi32>
    %c32_i32_34 = arith.constant 32 : i32
    %77 = vector.broadcast %c32_i32_34 : i32 to vector<32x256xi32>
    %78 = arith.cmpi slt, %76, %77 : vector<32x256xi32>
    %cst_35 = arith.constant 0.000000e+00 : f32
    %79 = vector.broadcast %cst_35 : f32 to vector<32x256xf32>
    %80 = arith.select %78, %75, %79 : vector<32x256xi1>, vector<32x256xf32>
    %c0_36 = arith.constant 0 : index
    %c0_37 = arith.constant 0 : index
    %81 = vector.load %arg8[%c0_36, %c0_37] : memref<32x96xbf16, #tpu.memory_space<vmem>>, vector<32x96xbf16>
    %c0_38 = arith.constant 0 : index
    %c0_39 = arith.constant 0 : index
    %82 = vector.load %arg9[%c0_38, %c0_39] : memref<32x1xf32, #tpu.memory_space<vmem>>, vector<32x1xf32>
    %cst_40 = arith.constant 0.000000e+00 : f32
    %83 = vector.broadcast %cst_40 : f32 to vector<32x256xf32>
    %84 = arith.cmpf oge, %80, %83 : vector<32x256xf32>
    %cst_41 = arith.constant 1.000000e-01 : f32
    %85 = vector.broadcast %cst_41 : f32 to vector<32x256xf32>
    %86 = arith.mulf %85, %80 : vector<32x256xf32>
    %87 = arith.select %84, %80, %86 : vector<32x256xi1>, vector<32x256xf32>
    %c1_i32_42 = arith.constant 1 : i32
    %88 = tpu.dynamic_rotate %87 by %c1_i32_42 dim 1 : vector<32x256xf32>, i32 -> vector<32x256xf32>
    %c255_i32 = arith.constant 255 : i32
    %89 = tpu.dynamic_rotate %87 by %c255_i32 dim 1 : vector<32x256xf32>, i32 -> vector<32x256xf32>
    %90 = tpu.concatenate %88, %87, %89 in 0 : vector<32x256xf32>, vector<32x256xf32>, vector<32x256xf32> -> vector<96x256xf32>
    %91 = arith.truncf %90 : vector<96x256xf32> to vector<96x256xbf16>
    %cst_43 = arith.constant dense<0.000000e+00> : vector<32x256xf32>
    %92 = tpu.matmul %81, %91, %cst_43 {dimension_numbers = #tpu.dot_dimension_numbers<[1], [0], [0], [1], [0, 0, 1, 1], [], []>} : vector<32x96xbf16>, vector<96x256xbf16>, vector<32x256xf32> -> vector<32x256xf32>
    %93 = vector.broadcast %82 : vector<32x1xf32> to vector<32x256xf32>
    %94 = arith.addf %92, %93 : vector<32x256xf32>
    %95 = tpu.iota {dimensions = array<i32: 1>} : vector<32x256xi32>
    %c32_i32_44 = arith.constant 32 : i32
    %96 = vector.broadcast %c32_i32_44 : i32 to vector<32x256xi32>
    %97 = arith.cmpi slt, %95, %96 : vector<32x256xi32>
    %cst_45 = arith.constant 0.000000e+00 : f32
    %98 = vector.broadcast %cst_45 : f32 to vector<32x256xf32>
    %99 = arith.select %97, %94, %98 : vector<32x256xi1>, vector<32x256xf32>
    %100 = arith.addf %99, %61 : vector<32x256xf32>
    %c0_46 = arith.constant 0 : index
    %c0_47 = arith.constant 0 : index
    %101 = vector.load %arg10[%c0_46, %c0_47] : memref<8x224xbf16, #tpu.memory_space<vmem>>, vector<8x224xbf16>
    %c0_48 = arith.constant 0 : index
    %c0_49 = arith.constant 0 : index
    %102 = vector.load %arg11[%c0_48, %c0_49] : memref<8x1xf32, #tpu.memory_space<vmem>>, vector<8x1xf32>
    %cst_50 = arith.constant 0.000000e+00 : f32
    %103 = vector.broadcast %cst_50 : f32 to vector<32x256xf32>
    %104 = arith.cmpf oge, %100, %103 : vector<32x256xf32>
    %cst_51 = arith.constant 1.000000e-01 : f32
    %105 = vector.broadcast %cst_51 : f32 to vector<32x256xf32>
    %106 = arith.mulf %105, %100 : vector<32x256xf32>
    %107 = arith.select %104, %100, %106 : vector<32x256xi1>, vector<32x256xf32>
    %c3_i32_52 = arith.constant 3 : i32
    %108 = tpu.dynamic_rotate %107 by %c3_i32_52 dim 1 : vector<32x256xf32>, i32 -> vector<32x256xf32>
    %c2_i32_53 = arith.constant 2 : i32
    %109 = tpu.dynamic_rotate %107 by %c2_i32_53 dim 1 : vector<32x256xf32>, i32 -> vector<32x256xf32>
    %c1_i32_54 = arith.constant 1 : i32
    %110 = tpu.dynamic_rotate %107 by %c1_i32_54 dim 1 : vector<32x256xf32>, i32 -> vector<32x256xf32>
    %c255_i32_55 = arith.constant 255 : i32
    %111 = tpu.dynamic_rotate %107 by %c255_i32_55 dim 1 : vector<32x256xf32>, i32 -> vector<32x256xf32>
    %c254_i32 = arith.constant 254 : i32
    %112 = tpu.dynamic_rotate %107 by %c254_i32 dim 1 : vector<32x256xf32>, i32 -> vector<32x256xf32>
    %c253_i32_56 = arith.constant 253 : i32
    %113 = tpu.dynamic_rotate %107 by %c253_i32_56 dim 1 : vector<32x256xf32>, i32 -> vector<32x256xf32>
    %114 = tpu.concatenate %108, %109, %110, %107, %111, %112, %113 in 0 : vector<32x256xf32>, vector<32x256xf32>, vector<32x256xf32>, vector<32x256xf32>, vector<32x256xf32>, vector<32x256xf32>, vector<32x256xf32> -> vector<224x256xf32>
    %115 = arith.truncf %114 : vector<224x256xf32> to vector<224x256xbf16>
    %cst_57 = arith.constant dense<0.000000e+00> : vector<8x256xf32>
    %116 = tpu.matmul %101, %115, %cst_57 {dimension_numbers = #tpu.dot_dimension_numbers<[1], [0], [0], [1], [0, 0, 1, 1], [], []>} : vector<8x224xbf16>, vector<224x256xbf16>, vector<8x256xf32> -> vector<8x256xf32>
    %117 = vector.broadcast %102 : vector<8x1xf32> to vector<8x256xf32>
    %118 = arith.addf %116, %117 : vector<8x256xf32>
    %119 = math.tanh %118 : vector<8x256xf32>
    %120 = tpu.iota {dimensions = array<i32: 1>} : vector<8x256xi32>
    %c32_i32_58 = arith.constant 32 : i32
    %121 = vector.broadcast %c32_i32_58 : i32 to vector<8x256xi32>
    %122 = arith.cmpi slt, %120, %121 : vector<8x256xi32>
    %cst_59 = arith.constant 0.000000e+00 : f32
    %123 = vector.broadcast %cst_59 : f32 to vector<8x256xf32>
    %124 = arith.select %122, %119, %123 : vector<8x256xi1>, vector<8x256xf32>
    %c0_60 = arith.constant 0 : index
    %c0_61 = arith.constant 0 : index
    %125 = vector.load %arg12[%c0_60, %c0_61] : memref<8x256xf32, #tpu.memory_space<vmem>>, vector<8x256xf32>
    tpu.vector_store %arg12[%c0_60, %c0_61], %124 {strides = array<i32>} : memref<8x256xf32, #tpu.memory_space<vmem>>, vector<8x256xf32>,
    return
  }
}

</mosaic_0001>

<bundles_post_ra>
// kernel: vocoder_forward.1
= control target key start
LH: loop header
LB: loop body
LE: loop exit
PB: predicated region body
PF: predicated region fallthrough
CT: control target
= control target key end

     0   :  { %s2455_s15 = smov 1   ;;  %s2456_s16 = smov 3   ;;  %vm265_vm0 = vcmask 654336   ;;  %v2461_v14 = vmov 0   ;;  %s3367_s0 = inlined_call_operand.vmem [shape: f32[48,128], index: 0, kind: input, shape index: {}]   ;;  %s3368_s1 = inlined_call_operand.vmem [shape: bf16[64,336], index: 1, kind: input, shape index: {}]   ;;  %s3369_s2 = inlined_call_operand.vmem [shape: f32[64,1], index: 2, kind: input, shape index: {}]   ;;  %s3370_s5 = inlined_call_operand.vmem [shape: f32[32,1], index: 5, kind: input, shape index: {}]   ;;  %s3371_s3 = inlined_call_operand.vmem [shape: bf16[32,128], index: 3, kind: input, shape index: {}]   ;;  %s3372_s4 = inlined_call_operand.vmem [shape: bf16[32,128], index: 4, kind: input, shape index: {}]   ;;  %s3373_s7 = inlined_call_operand.vmem [shape: f32[32,1], index: 7, kind: input, shape index: {}]   ;;  %s3374_s9 = inlined_call_operand.vmem [shape: f32[32,1], index: 9, kind: input, shape index: {}]   ;;  %s3375_s6 = inlined_call_operand.vmem [shape: bf16[32,96], index: 6, kind: input, shape index: {}]   ;;  %s3376_s8 = inlined_call_operand.vmem [shape: bf16[32,96], index: 8, kind: input, shape index: {}]   ;;  %s3377_s11 = inlined_call_operand.vmem [shape: f32[8,1], index: 11, kind: input, shape index: {}]   ;;  %s3378_s10 = inlined_call_operand.vmem [shape: bf16[8,224], index: 10, kind: input, shape index: {}]   ;;  %s3379_s12 = inlined_call_operand.vmem [shape: f32[8,256], index: 12, kind: output, shape index: {}]  }
   0x1   :  { %v2533_v0 = vld [vmem:[%s3367_s0 + $0x20] sm:$0xff]  ;;  %v2538_v1 = vld [vmem:[%s3367_s0 + $0x28] sm:$0xff]  ;;  %v2543_v2 = vld [vmem:[%s3367_s0 + $0x10] sm:$0xff]  ;;  %s2458_s17 = smov 127   ;;  %s2459_s18 = smov 126   ;;  %2185 = vset.pattern.permute.xlu0 %v2461_v14  ;;  %2186 = vset.pattern.permute.xlu1 %v2461_v14 }
   0x2   :  { %v2095_v3 = vpack.i.bf16 %v2538_v1, %v2533_v0  ;;  %v2550_v4 = vld [vmem:[%s3367_s0 + $0x18] sm:$0xff]  ;;  %v2555_v5 = vld [vmem:[%s3367_s0] sm:$0xff]  ;;  %v2560_v6 = vld [vmem:[%s3367_s0 + $0x8] sm:$0xff]  ;;  %v155_v11 = vpack.c.bf16 %v2538_v1, %v2533_v0  ;;  %s2457_s0 = smov 2   ;;  %s2460_s21 = smov 125  }
   0x3   :  { %v2105_v7 = vpack.i.bf16 %v2550_v4, %v2543_v2  ;;  %v2100_v8 = vpack.i.bf16 %v2560_v6, %v2555_v5  ;;  %v153_v9 = vpack.c.bf16 %v2560_v6, %v2555_v5  ;;  %v154_v10 = vpack.c.bf16 %v2550_v4, %v2543_v2  ;;  %v2429_v12 = vld [vmem:[%s3368_s1 + $0x4] ss:$12 sps:$4 sm:$0xff]   ;;  %v2433_v13 = vld [vmem:[%s3368_s1 + $0x8] ss:$12 sps:$4 sm:$0xff]   ;;  %v67_v18 = vld [vmem:[%s3369_s2 + $0x18] sm:$0xff] }
   0x4   :  { %2096 = vrot.lane.b32.xlu0 %v2095_v3, %s2455_s15  ;;  %310 = vmatprep.mubr.bf16.mxu0 %v2429_v12  ;;  %v64_v15 = vld [vmem:[%s3369_s2] sm:$0xff]  ;;  %v65_v16 = vld [vmem:[%s3369_s2 + $0x8] sm:$0xff]  ;;  %v66_v17 = vld [vmem:[%s3369_s2 + $0x10] sm:$0xff] }
   0x5   :  { %2106 = vrot.lane.b32.xlu1 %v2105_v7, %s2456_s16  ;;  %1965 = vmatprep.mubr.msk.bf16.mxu1 %vm265_vm0, %v2433_v13  ;;  %v68_v19 = vld [vmem:[%s3369_s2 + $0x20] sm:$0xff]  ;;  %v69_v20 = vld [vmem:[%s3369_s2 + $0x28] sm:$0xff]  ;;  %v70_v21 = vld [vmem:[%s3369_s2 + $0x30] sm:$0xff] }
   0x6   :  { %v71_v22 = vld [vmem:[%s3369_s2 + $0x38] sm:$0xff] }
   0x8   :  { %2101 = vrot.lane.b32.xlu0 %v2100_v8, %s2456_s16 }
   0x9   :  { %2111 = vrot.lane.b32.xlu1 %v2095_v3, %s2456_s16 }
   0xc   :  { %2116 = vrot.lane.b32.xlu0 %v2100_v8, %s2457_s0 }
   0xd   :  { %2121 = vrot.lane.b32.xlu1 %v2100_v8, %s2458_s17 }
  0x10   :  { %2126 = vrot.lane.b32.xlu0 %v2105_v7, %s2457_s0 }
  0x11   :  { %2131 = vrot.lane.b32.xlu1 %v2105_v7, %s2458_s17 }
  0x14   :  { %2136 = vrot.lane.b32.xlu0 %v2095_v3, %s2457_s0 }
  0x15   :  { %2141 = vrot.lane.b32.xlu1 %v2095_v3, %s2458_s17 }
  0x18   :  { %2146 = vrot.lane.b32.xlu0 %v2100_v8, %s2455_s15 }
  0x19   :  { %2151 = vrot.lane.b32.xlu1 %v2100_v8, %s2459_s18 }
  0x1c   :  { %2156 = vrot.lane.b32.xlu0 %v2105_v7, %s2459_s18 }
  0x1d   :  { %2161 = vrot.lane.b32.xlu1 %v2105_v7, %s2455_s15 }
  0x20   :  { %2166 = vrot.lane.b32.xlu0 %v2095_v3, %s2459_s18 }
  0x21   :  { %2171 = vrot.lane.b32.xlu1 %v2100_v8, %s2460_s21 }
  0x24   :  { %2176 = vrot.lane.b32.xlu0 %v2105_v7, %s2460_s21 }
  0x25   :  { %2181 = vrot.lane.b32.xlu1 %v2095_v3, %s2460_s21 }
  0x28   :  { %167 = vperm.xlu0 %2185, %v64_v15  }
  0x29   :  { %172 = vperm.xlu1 %2186, %v65_v16  }
  0x2c   :  { %182 = vperm.xlu0 %2185, %v67_v18  }
  0x2d   :  { %177 = vperm.xlu1 %2186, %v66_v17  }
  0x30   :  { %192 = vperm.xlu0 %2185, %v69_v20  }
  0x31   :  { %187 = vperm.xlu1 %2186, %v68_v19  }
  0x34   :  { %202 = vperm.xlu0 %2185, %v71_v22  }
  0x35   :  { %197 = vperm.xlu1 %2186, %v70_v21  }
  0x76   :  { %v2097_v23 = vpop.permute.xlu0 %2096 }
  0x77   :  { %v2099_v24 = vunpack.i.h.bf16 %v2097_v23  ;;  %v2098_v25 = vunpack.i.l.bf16 %v2097_v23  ;;  %v2107_v26 = vpop.permute.xlu1 %2106 }
  0x78   :  { %v2109_v29 = vunpack.i.h.bf16 %v2107_v26  ;;  %v2108_v30 = vunpack.i.l.bf16 %v2107_v26 }
  0x79   :  { %v152_v27 = vpack.c.bf16 %v2099_v24, %v2098_v25 }
  0x7a   :  { %v2102_v28 = vpop.permute.xlu0 %2101  ;;  %v145_v36 = vpack.c.bf16 %v2109_v29, %v2108_v30 }
  0x7b   :  { %v2104_v31 = vunpack.i.h.bf16 %v2102_v28  ;;  %v2103_v32 = vunpack.i.l.bf16 %v2102_v28  ;;  %1886 = vmatprep.subr.bf16.mxu0 %v152_v27  ;;  %v2112_v33 = vpop.permute.xlu1 %2111 }
  0x7c   :  { %v2114_v37 = vunpack.i.h.bf16 %v2112_v33  ;;  %v2113_v38 = vunpack.i.l.bf16 %v2112_v33 }
  0x7d   :  { %v144_v34 = vpack.c.bf16 %v2104_v31, %v2103_v32  ;;  %v2427_v31 = vld [vmem:[%s3368_s1] ss:$12 sps:$4 sm:$0xff]   ;;  %v2430_v32 = vld [vmem:[%s3368_s1 + $0x1c] ss:$12 sps:$4 sm:$0xff]  }
  0x7e   :  { %v2117_v35 = vpop.permute.xlu0 %2116  ;;  %v146_v41 = vpack.c.bf16 %v2114_v37, %v2113_v38  ;;  %v2438_v37 = vld [vmem:[%s3368_s1 + $0x38] ss:$12 sps:$4 sm:$0xff]   ;;  %v2437_v38 = vld [vmem:[%s3368_s1 + $0x30] ss:$12 sps:$4 sm:$0xff]  }
  0x7f   :  { %1887 = vmatpush3.bf16.msra.mxu0 %v144_v34  ;;  %v2122_v39 = vpop.permute.xlu1 %2121  ;;  %v2119_v42 = vunpack.i.h.bf16 %v2117_v35  ;;  %v2118_v43 = vunpack.i.l.bf16 %v2117_v35  ;;  %v2432_v34 = vld [vmem:[%s3368_s1 + $0x18] ss:$12 sps:$4 sm:$0xff]   ;;  %v2434_v35 = vld [vmem:[%s3368_s1 + $0x20] ss:$12 sps:$4 sm:$0xff]  }
  0x80   :  { %1888 = vmatprep.subr.bf16.mxu0 %v153_v9  ;;  %v2124_v45 = vunpack.i.h.bf16 %v2122_v39  ;;  %v2123_v46 = vunpack.i.l.bf16 %v2122_v39  ;;  %v2439_v39 = vld [vmem:[%s3368_s1 + $0x50] ss:$12 sps:$4 sm:$0xff]  }
  0x81   :  { %v147_v48 = vpack.c.bf16 %v2119_v42, %v2118_v43 }
  0x82   :  { %v2127_v40 = vpop.permute.xlu0 %2126  ;;  %v156_v52 = vpack.c.bf16 %v2124_v45, %v2123_v46 }
  0x83   :  { %1889 = vmatpush3.bf16.msra.mxu0 %v145_v36  ;;  %v2132_v44 = vpop.permute.xlu1 %2131  ;;  %v2129_v49 = vunpack.i.h.bf16 %v2127_v40  ;;  %v2128_v50 = vunpack.i.l.bf16 %v2127_v40  ;;  %v2435_v36 = vld [vmem:[%s3368_s1 + $0x34] ss:$12 sps:$4 sm:$0xff]   ;;  %v2440_v40 = vld [vmem:[%s3368_s1 + $0x4c] ss:$12 sps:$4 sm:$0xff]  }
  0x84   :  { %1890 = vmatprep.subr.bf16.mxu0 %v154_v10  ;;  %v2134_v53 = vunpack.i.h.bf16 %v2132_v44  ;;  %v2133_v54 = vunpack.i.l.bf16 %v2132_v44 }
  0x85   :  { %v148_v56 = vpack.c.bf16 %v2129_v49, %v2128_v50 }
  0x86   :  { %v2137_v47 = vpop.permute.xlu0 %2136  ;;  %v157_v60 = vpack.c.bf16 %v2134_v53, %v2133_v54 }
  0x87   :  { %1891 = vmatpush3.bf16.msra.mxu0 %v146_v41  ;;  %v2142_v51 = vpop.permute.xlu1 %2141  ;;  %v2139_v57 = vunpack.i.h.bf16 %v2137_v47  ;;  %v2138_v58 = vunpack.i.l.bf16 %v2137_v47  ;;  %v2442_v41 = vld [vmem:[%s3368_s1 + $0x48] ss:$12 sps:$4 sm:$0xff]   ;;  %v408_v47 = vlaneseq }
  0x88   :  { %1892 = vmatprep.subr.bf16.mxu0 %v155_v11  ;;  %v2144_v61 = vunpack.i.h.bf16 %v2142_v51  ;;  %v2143_v62 = vunpack.i.l.bf16 %v2142_v51 }
  0x89   :  { %v149_v4 = vpack.c.bf16 %v2139_v57, %v2138_v58  ;;  %v2666_v51 = vand.u32 127, %v408_v47 }
  0x8a   :  { %v2147_v55 = vpop.permute.xlu0 %2146  ;;  %v158_v0 = vpack.c.bf16 %v2144_v61, %v2143_v62 }
  0x8b   :  { %1893 = vmatpush3.bf16.msra.mxu0 %v147_v48  ;;  %v2152_v59 = vpop.permute.xlu1 %2151  ;;  %v2149_v63 = vunpack.i.h.bf16 %v2147_v55  ;;  %v2148_v2 = vunpack.i.l.bf16 %v2147_v55  ;;  %vm410_vm1 = vcmp.lt.s32.totalorder %v2666_v51, 16 }
  0x8c   :  { %1894 = vmatprep.subr.bf16.mxu0 %v156_v52  ;;  %v2154_v1 = vunpack.i.h.bf16 %v2152_v59  ;;  %v2153_v8 = vunpack.i.l.bf16 %v2152_v59 }
  0x8d   :  { %v150_v10 = vpack.c.bf16 %v2149_v63, %v2148_v2 }
  0x8e   :  { %v2157_v3 = vpop.permute.xlu0 %2156  ;;  %v159_v18 = vpack.c.bf16 %v2154_v1, %v2153_v8 }
  0x8f   :  { %v2159_v5 = vunpack.i.h.bf16 %v2157_v3  ;;  %v2158_v6 = vunpack.i.l.bf16 %v2157_v3  ;;  %1895 = vmatpush3.bf16.msra.mxu0 %v148_v56  ;;  %v2162_v7 = vpop.permute.xlu1 %2161 }
  0x90   :  { %1896 = vmatprep.subr.bf16.mxu0 %v157_v60  ;;  %v2164_v12 = vunpack.i.h.bf16 %v2162_v7  ;;  %v2163_v13 = vunpack.i.l.bf16 %v2162_v7 }
  0x91   :  { %v160_v9 = vpack.c.bf16 %v2159_v5, %v2158_v6 }
  0x92   :  { %v2167_v11 = vpop.permute.xlu0 %2166  ;;  %v151_v24 = vpack.c.bf16 %v2164_v12, %v2163_v13 }
  0x93   :  { %v2169_v15 = vunpack.i.h.bf16 %v2167_v11  ;;  %v2168_v16 = vunpack.i.l.bf16 %v2167_v11  ;;  %1897 = vmatpush3.bf16.msra.mxu0 %v149_v4  ;;  %1955 = vmatprep.subr.bf16.mxu1 %v160_v9  ;;  %v2172_v17 = vpop.permute.xlu1 %2171 }
  0x94   :  { %1898 = vmatprep.subr.bf16.mxu0 %v158_v0  ;;  %1956 = vmatpush3.bf16.msra.mxu1 %v160_v9  ;;  %v2174_v19 = vunpack.i.h.bf16 %v2172_v17  ;;  %v2173_v20 = vunpack.i.l.bf16 %v2172_v17 }
  0x95   :  { %v161_v21 = vpack.c.bf16 %v2169_v15, %v2168_v16 }
  0x96   :  { %v162_v22 = vpack.c.bf16 %v2174_v19, %v2173_v20  ;;  %v2177_v23 = vpop.permute.xlu0 %2176 }
  0x97   :  { %1899 = vmatpush3.bf16.msra.mxu0 %v150_v10  ;;  %1957 = vmatprep.subr.bf16.mxu1 %v161_v21  ;;  %v2179_v25 = vunpack.i.h.bf16 %v2177_v23  ;;  %v2178_v26 = vunpack.i.l.bf16 %v2177_v23  ;;  %v2182_v27 = vpop.permute.xlu1 %2181 }
  0x98   :  { %1900 = vmatprep.subr.bf16.mxu0 %v159_v18  ;;  %1958 = vmatpush3.bf16.msra.mxu1 %v161_v21  ;;  %v2184_v29 = vunpack.i.h.bf16 %v2182_v27  ;;  %v2183_v30 = vunpack.i.l.bf16 %v2182_v27 }
  0x99   :  { %v163_v28 = vpack.c.bf16 %v2179_v25, %v2178_v26  ;;  %1959 = vmatprep.subr.bf16.mxu1 %v162_v22 }
  0x9a   :  { %v164_v33 = vpack.c.bf16 %v2184_v29, %v2183_v30 }
  0x9b   :  { %1901 = vmatpush3.bf16.msra.mxu0 %v151_v24 }
  0x9c   :  { %1960 = vmatpush3.bf16.msra.mxu1 %v162_v22 }
  0x9d   :  { %1961 = vmatprep.subr.bf16.mxu1 %v163_v28 }
  0x9e   :  { %311 = vmatmul.mubr.bf16.vlgmr.msra.gmra.mrb[0].mxu0 %v2427_v31 }
  0x9f   :  { %318 = vmatprep.mubr.bf16.mxu0 %v2430_v32 }
  0xa0   :  { %1962 = vmatpush3.bf16.msra.mxu1 %v163_v28 }
  0xa1   :  { %1963 = vmatprep.subr.bf16.mxu1 %v164_v33 }
  0xa4   :  { %1964 = vmatpush3.bf16.msra.mxu1 %v164_v33 }
  0xa6   :  { %319 = vmatmul.mubr.bf16.gmra.mrb[4].mxu0 %v2432_v34 }
  0xa7   :  { %1966 = vmatmul.mubr.msk.bf16.vlgmr.msra.gmra.mrb[0].mxu1 %vm265_vm0, %v2434_v35  ;;  %326 = vmatprep.mubr.bf16.mxu0 %v2435_v36  ;;  %v168_v50 = vpop.permute.xlu0 %167 }
  0xa8   :  { %1969 = vmatprep.mubr.msk.bf16.mxu1 %vm265_vm0, %v2438_v37  ;;  %v173_v46 = vpop.permute.xlu1 %172 }
  0xab   :  { %v183_v5 = vpop.permute.xlu0 %182 }
  0xac   :  { %v178_v53 = vpop.permute.xlu1 %177 }
  0xae   :  { %327 = vmatmul.mubr.bf16.gmra.mrb[8].mxu0 %v2437_v38 }
  0xaf   :  { %1970 = vmatmul.mubr.msk.bf16.gmra.mrb[4].mxu1 %vm265_vm0, %v2439_v39  ;;  %334 = vmatprep.mubr.bf16.mxu0 %v2440_v40  ;;  %v193_v34 = vpop.permute.xlu0 %192 }
  0xb0   :  { %v188_v16 = vpop.permute.xlu1 %187 }
  0xb6   :  { %335 = vmatmul.mubr.bf16.gmra.mrb[12].mxu0 %v2442_v41 }
 0x171   :  { %v1902_v42 = vpop.f32.mrb[0].mxu0 }
 0x172   :  { %v1903_v43 = vpop.f32.mrb[1].mxu0 }
 0x173   :  { %v1904_v44 = vadd.f32 %v1903_v43, %v1902_v42  ;;  %v1905_v45 = vpop.f32.mrb[2].mxu0 }
 0x174   :  { %v1906_v48 = vpop.f32.mrb[3].mxu0 }
 0x175   :  { %v1907_v49 = vadd.f32 %v1906_v48, %v1905_v45  ;;  %v313_v54 = vadd.f32 %v1904_v44, %v168_v50 }
 0x177   :  { %v316_v60 = vadd.f32 %v1907_v49, %v173_v46  ;;  %v198_v49 = vpop.permute.xlu1 %197 }
 0x179   :  { %v1908_v52 = vpop.f32.mrb[4].mxu0 }
 0x17a   :  { %v1909_v55 = vpop.f32.mrb[5].mxu0  ;;  %v1967_v56 = vpop.f32.mrb[0].mxu1 }
 0x17b   :  { %v1910_v57 = vadd.f32 %v1909_v55, %v1908_v52  ;;  %v1911_v58 = vpop.f32.mrb[6].mxu0  ;;  %v377_v59 = vpop.f32.mrb[1].mxu1 }
 0x17c   :  { %v378_v61 = vadd.f32 %v377_v59, %v313_v54  ;;  %v1912_v62 = vpop.f32.mrb[7].mxu0  ;;  %v1968_v63 = vpop.f32.mrb[2].mxu1 }
 0x17d   :  { %v321_v2 = vadd.f32 %v1910_v57, %v178_v53  ;;  %v1913_v3 = vadd.f32 %v1912_v62, %v1911_v58  ;;  %v380_v4 = vpop.f32.mrb[3].mxu1  ;;  %v203_v55 = vpop.permute.xlu0 %202 }
 0x17e   :  { %v411_v6 = vsel %vm410_vm1, %v378_v61, 0.0  ;;  %v381_v7 = vadd.f32 %v380_v4, %v316_v60 }
 0x17f   :  { %v386_v0 = vadd.f32 %v1967_v56, %v321_v2  ;;  %v324_v1 = vadd.f32 %v1913_v3, %v183_v5  ;;  %v427_v8 = vmul.f32 0.1, %v411_v6  ;;  %vm419_vm2 = vcmp.ge.f32.partialorder %v411_v6, 0.0 }
 0x180   :  { %v412_v9 = vsel %vm410_vm1, %v381_v7, 0.0 }
 0x181   :  { %v413_v10 = vsel %vm410_vm1, %v386_v0, 0.0  ;;  %v389_v11 = vadd.f32 %v1968_v63, %v324_v1  ;;  %vm420_vm3 = vcmp.ge.f32.partialorder %v412_v9, 0.0  ;;  %v1914_v12 = vpop.f32.mrb[8].mxu0  ;;  %v428_v15 = vmul.f32 0.1, %v412_v9  ;;  %v491_v1 = vld [vmem:[%s3370_s5] sm:$0xff] }
 0x182   :  { %v429_v13 = vmul.f32 0.1, %v413_v10  ;;  %v1915_v17 = vpop.f32.mrb[9].mxu0  ;;  %vm421_vm4 = vcmp.ge.f32.partialorder %v413_v10, 0.0  ;;  %v1971_v21 = vpop.f32.mrb[4].mxu1  ;;  %v435_v22 = vsel %vm419_vm2, %v411_v6, %v427_v8  ;;  %v493_v8 = vld [vmem:[%s3370_s5 + $0x10] sm:$0xff] }
 0x183   :  { %v414_v18 = vsel %vm410_vm1, %v389_v11, 0.0  ;;  %v1916_v19 = vadd.f32 %v1915_v17, %v1914_v12  ;;  %v1917_v20 = vpop.f32.mrb[10].mxu0  ;;  %v436_v24 = vsel %vm420_vm3, %v412_v9, %v428_v15  ;;  %v393_v26 = vpop.f32.mrb[5].mxu1  ;;  %v2443_v9 = vld [vmem:[%s3371_s3] sm:$0xff]   ;;  %v494_v12 = vld [vmem:[%s3370_s5 + $0x18] sm:$0xff]  ;;  %v1076_v15 = vld [vmem:[%s3373_s7 + $0x8] sm:$0xff] }
 0x184   :  { %vm422_vm5 = vcmp.ge.f32.partialorder %v414_v18, 0.0  ;;  %v430_v23 = vmul.f32 0.1, %v414_v18  ;;  %v1918_v25 = vpop.f32.mrb[11].mxu0  ;;  %v2677_v27 = vpack.c.bf16 %v436_v24, %v435_v22  ;;  %v2187_v30 = vpack.i.bf16 %v436_v24, %v435_v22  ;;  %v1972_v31 = vpop.f32.mrb[6].mxu1  ;;  %1989 = vmatprep.mubr.bf16.mxu1 %v2443_v9  ;;  %v2445_v11 = vld [vmem:[%s3372_s4] sm:$0xff]  }
 0x185   :  { %v1919_v28 = vadd.f32 %v1918_v25, %v1917_v20  ;;  %v329_v29 = vadd.f32 %v1916_v19, %v188_v16  ;;  %v437_v32 = vsel %vm421_vm4, %v413_v10, %v429_v13  ;;  %v396_v35 = vpop.f32.mrb[7].mxu1  ;;  %v492_v10 = vld [vmem:[%s3370_s5 + $0x8] sm:$0xff]  ;;  %2009 = vmatprep.mubr.bf16.mxu0 %v2445_v11  ;;  %v2462_v13 = vmov 0.0   ;;  %v1078_v16 = vld [vmem:[%s3373_s7 + $0x18] sm:$0xff] }
 0x186   :  { %v438_v33 = vsel %vm422_vm5, %v414_v18, %v430_v23  ;;  %2188 = vrot.lane.b32.xlu1 %v2187_v30, %s2458_s17  ;;  %1973 = vmatprep.subr.bf16.mxu1 %v2677_v27  ;;  %v1268_v17 = vld [vmem:[%s3374_s9 + $0x8] sm:$0xff]  ;;  %v1270_v18 = vld [vmem:[%s3374_s9 + $0x18] sm:$0xff]  ;;  %1722 = vst [vmem:[%s3379_s12 + $0x8] sm:$0xff] %v2462_v13 }
 0x187   :  { %v2680_v36 = vpack.c.bf16 %v438_v33, %v437_v32  ;;  %v394_v37 = vadd.f32 %v393_v26, %v329_v29  ;;  %v332_v38 = vadd.f32 %v1919_v28, %v193_v34  ;;  %1974 = vmatpush3.bf16.msra.mxu1 %v2677_v27  ;;  %v2192_v39 = vpack.i.bf16 %v438_v33, %v437_v32 }
 0x188   :  { %v2757_v33 = vshrl.u32 %v408_v47, 7 }
 0x189   :  { %v415_v40 = vsel %vm410_vm1, %v394_v37, 0.0  ;;  %v397_v41 = vadd.f32 %v396_v35, %v332_v38  ;;  %v1920_v42 = vpop.f32.mrb[12].mxu0  ;;  %1975 = vmatprep.subr.bf16.mxu1 %v2680_v36  ;;  %2193 = vrot.lane.b32.xlu0 %v2192_v39, %s2458_s17 }
 0x18a   :  { %v431_v43 = vmul.f32 0.1, %v415_v40  ;;  %v1921_v44 = vpop.f32.mrb[13].mxu0  ;;  %vm423_vm6 = vcmp.ge.f32.partialorder %v415_v40, 0.0  ;;  %v651_v11 = vadd.s32 72, %v2757_v33 }
 0x18b   :  { %v416_v45 = vsel %vm410_vm1, %v397_v41, 0.0  ;;  %v1922_v46 = vadd.f32 %v1921_v44, %v1920_v42  ;;  %v1923_v48 = vpop.f32.mrb[14].mxu0  ;;  %1976 = vmatpush3.bf16.msra.mxu1 %v2680_v36 }
 0x18c   :  { %vm424_vm7 = vcmp.ge.f32.partialorder %v416_v45, 0.0  ;;  %v432_v50 = vmul.f32 0.1, %v416_v45  ;;  %v1924_v52 = vpop.f32.mrb[15].mxu0  ;;  %v439_v56 = vsel %vm423_vm6, %v415_v40, %v431_v43 }
 0x18d   :  { %v337_v53 = vadd.f32 %v1922_v46, %v198_v49  ;;  %v1925_v54 = vadd.f32 %v1924_v52, %v1923_v48  ;;  %v644_v46 = vadd.s32 16, %v2757_v33  ;;  %v645_v48 = vadd.s32 24, %v2757_v33 }
 0x18e   :  { %v440_v57 = vsel %vm424_vm7, %v416_v45, %v432_v50  ;;  %v2761_v45 = vmul.u32 2, %v2757_v33 }
 0x18f   :  { %v2692_v58 = vpack.c.bf16 %v440_v57, %v439_v56  ;;  %v402_v59 = vadd.f32 %v1971_v21, %v337_v53  ;;  %v340_v60 = vadd.f32 %v1925_v54, %v203_v55  ;;  %v2197_v61 = vpack.i.bf16 %v440_v57, %v439_v56 }
 0x190   :  { %v2769_v55 = vadd.s32 128, %v2666_v51  ;;  %v646_v56 = vadd.s32 32, %v2757_v33 }
 0x191   :  { %v417_v62 = vsel %vm410_vm1, %v402_v59, 0.0  ;;  %v405_v63 = vadd.f32 %v1972_v31, %v340_v60  ;;  %2198 = vrot.lane.b32.xlu1 %v2197_v61, %s2458_s17  ;;  %1977 = vmatprep.subr.bf16.mxu1 %v2692_v58  ;;  %v771_v59 = vadd.s32 1, %v2761_v45  ;;  %v2773_v60 = vmul.u32 2, %v644_v46 }
 0x192   :  { %v433_v2 = vmul.f32 0.1, %v417_v62  ;;  %1978 = vmatpush3.bf16.msra.mxu1 %v2692_v58  ;;  %vm425_vm8 = vcmp.ge.f32.partialorder %v417_v62, 0.0 }
 0x193   :  { %v418_v3 = vsel %vm410_vm1, %v405_v63, 0.0  ;;  %vm788_vm10 = vcmp.eq.s32.totalorder %v2769_v55, %v771_v59  ;;  %vm787_vm13 = vcmp.eq.s32.totalorder %v2666_v51, %v771_v59 }
 0x194   :  { %v434_v4 = vmul.f32 0.1, %v418_v3  ;;  %vm426_vm9 = vcmp.ge.f32.partialorder %v418_v3, 0.0  ;;  %v441_v5 = vsel %vm425_vm8, %v417_v62, %v433_v2  ;;  %v647_v62 = vadd.s32 40, %v2757_v33 }
 0x195   :  { %2208 = vrot.lane.b32.xlu1 %v2187_v30, %s2455_s15 }
 0x196   :  { %v442_v6 = vsel %vm426_vm9, %v418_v3, %v434_v4 }
 0x197   :  { %v2202_v7 = vpack.i.bf16 %v442_v6, %v441_v5  ;;  %v2702_v0 = vpack.c.bf16 %v442_v6, %v441_v5  ;;  %v648_v5 = vadd.s32 48, %v2757_v33  ;;  %v773_v6 = vadd.s32 1, %v2773_v60 }
 0x199   :  { %2203 = vrot.lane.b32.xlu0 %v2202_v7, %s2458_s17  ;;  %2218 = vrot.lane.b32.xlu1 %v2197_v61, %s2455_s15  ;;  %v2775_v61 = vmul.u32 2, %v645_v48  ;;  %vm792_vm15 = vcmp.eq.s32.totalorder %v2769_v55, %v773_v6  ;;  %vm791_vm2 = vcmp.eq.s32.totalorder %v2666_v51, %v773_v6 }
 0x19a   :  { %1979 = vmatprep.subr.bf16.mxu1 %v2702_v0 }
 0x19b   :  { %1980 = vmatpush3.bf16.msra.mxu1 %v2702_v0  ;;  %v774_v9 = vadd.s32 1, %v2775_v61 }
 0x19d   :  { %2213 = vrot.lane.b32.xlu0 %v2192_v39, %s2455_s15  ;;  %497 = vperm.xlu1 %2186, %v491_v1   ;;  %v643_v39 = vadd.s32 8, %v2757_v33  ;;  %v649_v1 = vadd.s32 56, %v2757_v33  ;;  %vm794_vm0 = vcmp.eq.s32.totalorder %v2769_v55, %v774_v9  ;;  %vm793_vm4 = vcmp.eq.s32.totalorder %v2666_v51, %v774_v9 }
 0x19e   :  { %vm2017_vm3 = vmpackc.low %vm794_vm0, %vm792_vm15 }
 0x19f   :  { %v2763_v47 = vmul.u32 2, %v643_v39  ;;  %vm2019_vm7 = vmpackc.low %vm793_vm4, %vm791_vm2  ;;  %v656_v39 = vadd.s32 112, %v2757_v33 }
 0x1a1   :  { %2223 = vrot.lane.b32.xlu0 %v2202_v7, %s2455_s15  ;;  %507 = vperm.xlu1 %2186, %v493_v8   ;;  %v772_v4 = vadd.s32 1, %v2763_v47  ;;  %v2784_v7 = vmul.u32 2, %v646_v56 }
 0x1a3   :  { %vm790_vm11 = vcmp.eq.s32.totalorder %v2769_v55, %v772_v4  ;;  %vm789_vm14 = vcmp.eq.s32.totalorder %v2666_v51, %v772_v4 }
 0x1a4   :  { %vm2013_vm12 = vmpackc.low %vm790_vm11, %vm788_vm10 }
 0x1a5   :  { %502 = vperm.xlu0 %2185, %v492_v10   ;;  %v2789_v10 = vmul.u32 2, %v647_v62  ;;  %vm2015_vm1 = vmpackc.low %vm789_vm14, %vm787_vm13 }
 0x1a9   :  { %512 = vperm.xlu0 %2185, %v494_v12   ;;  %v775_v12 = vadd.s32 1, %v2784_v7 }
 0x1ab   :  { %vm796_vm5 = vcmp.eq.s32.totalorder %v2769_v55, %v775_v12  ;;  %vm795_vm8 = vcmp.eq.s32.totalorder %v2666_v51, %v775_v12 }
 0x1ad   :  { %2228 = vrot.lane.b32.xlu0 %v2462_v13, %s2456_s16 }
 0x1b1   :  { %2243 = vrot.lane.b32.xlu0 %v2462_v13, %s2456_s16 }
 0x1b5   :  { %2253 = vrot.lane.b32.xlu0 %v2462_v13, %s2460_s21 }
 0x1b9   :  { %2263 = vrot.lane.b32.xlu0 %v2462_v13, %s2460_s21 }
 0x1bd   :  { %1172 = vperm.xlu0 %2185, %v1076_v15   ;;  %v2798_v15 = vmul.u32 2, %v648_v5 }
 0x1c1   :  { %1182 = vperm.xlu0 %2185, %v1078_v16   ;;  %v776_v16 = vadd.s32 1, %v2789_v10 }
 0x1c3   :  { %vm798_vm6 = vcmp.eq.s32.totalorder %v2769_v55, %v776_v16  ;;  %vm797_vm9 = vcmp.eq.s32.totalorder %v2666_v51, %v776_v16 }
 0x1c4   :  { %vm2021_vm10 = vmpackc.low %vm798_vm6, %vm796_vm5 }
 0x1c5   :  { %2268 = vrot.lane.b32.xlu0 %v2462_v13, %s2455_s15  ;;  %vm2023_vm13 = vmpackc.low %vm797_vm9, %vm795_vm8 }
 0x1c9   :  { %2283 = vrot.lane.b32.xlu0 %v2462_v13, %s2455_s15 }
 0x1cd   :  { %2293 = vrot.lane.b32.xlu0 %v2462_v13, %s2458_s17 }
 0x1d1   :  { %2303 = vrot.lane.b32.xlu0 %v2462_v13, %s2458_s17 }
 0x1d5   :  { %1364 = vperm.xlu0 %2185, %v1268_v17   ;;  %v2806_v17 = vmul.u32 2, %v649_v1 }
 0x1d9   :  { %1374 = vperm.xlu0 %2185, %v1270_v18   ;;  %v2463_v18 = vmov 1.0|1.0  }
 0x1dd   :  { %2308 = vrot.lane.b32.xlu0 %v2462_v13, %s2456_s16 }
 0x1e1   :  { %2313 = vrot.lane.b32.xlu0 %v2462_v13, %s2456_s16 }
 0x1e5   :  { %2333 = vrot.lane.b32.xlu0 %v2462_v13, %s2457_s0 }
 0x1e9   :  { %2338 = vrot.lane.b32.xlu0 %v2462_v13, %s2457_s0 }
 0x1ed   :  { %2353 = vrot.lane.b32.xlu0 %v2462_v13, %s2455_s15 }
 0x1f1   :  { %2363 = vrot.lane.b32.xlu0 %v2462_v13, %s2455_s15 }
 0x1f5   :  { %2373 = vrot.lane.b32.xlu0 %v2462_v13, %s2458_s17 }
 0x1f8   :  { %v2189_v19 = vpop.permute.xlu1 %2188 }
 0x1f9   :  { %v2191_v20 = vunpack.i.h.bf16 %v2189_v19  ;;  %v2190_v21 = vunpack.i.l.bf16 %v2189_v19  ;;  %v652_v19 = vadd.s32 80, %v2757_v33  ;;  %2378 = vrot.lane.b32.xlu0 %v2462_v13, %s2458_s17 }
 0x1fb   :  { %v483_v22 = vpack.c.bf16 %v2191_v20, %v2190_v21  ;;  %v2194_v23 = vpop.permute.xlu0 %2193  ;;  %v777_v20 = vadd.s32 1, %v2798_v15 }
 0x1fc   :  { %v2196_v24 = vunpack.i.h.bf16 %v2194_v23  ;;  %v2195_v25 = vunpack.i.l.bf16 %v2194_v23  ;;  %v778_v23 = vadd.s32 1, %v2806_v17 }
 0x1fd   :  { %1993 = vmatprep.subr.bf16.mxu0 %v483_v22  ;;  %vm800_vm11 = vcmp.eq.s32.totalorder %v2769_v55, %v777_v20  ;;  %vm799_vm15 = vcmp.eq.s32.totalorder %v2666_v51, %v777_v20  ;;  %2393 = vrot.lane.b32.xlu0 %v2462_v13, %s2459_s18 }
 0x1fe   :  { %v484_v26 = vpack.c.bf16 %v2196_v24, %v2195_v25  ;;  %1994 = vmatpush3.bf16.msra.mxu0 %v483_v22  ;;  %v2817_v22 = vmul.u32 2, %v651_v11  ;;  %v653_v24 = vadd.s32 88, %v2757_v33  ;;  %vm801_vm0 = vcmp.eq.s32.totalorder %v2666_v51, %v778_v23 }
 0x200   :  { %1995 = vmatprep.subr.bf16.mxu0 %v484_v26 }
 0x201   :  { %2398 = vrot.lane.b32.xlu0 %v2462_v13, %s2459_s18 }
 0x202   :  { %1996 = vmatpush3.bf16.msra.mxu0 %v484_v26  ;;  %v2837_v26 = vmul.u32 2, %v652_v19 }
 0x203   :  { %v2199_v28 = vpop.permute.xlu1 %2198 }
 0x204   :  { %v2201_v29 = vunpack.i.h.bf16 %v2199_v28  ;;  %v2200_v30 = vunpack.i.l.bf16 %v2199_v28  ;;  %v2840_v28 = vmul.u32 2, %v653_v24 }
 0x205   :  { %2413 = vrot.lane.b32.xlu0 %v2462_v13, %s2460_s21 }
 0x206   :  { %v485_v31 = vpack.c.bf16 %v2201_v29, %v2200_v30  ;;  %v654_v29 = vadd.s32 96, %v2757_v33  ;;  %v655_v30 = vadd.s32 104, %v2757_v33 }
 0x207   :  { %v2209_v32 = vpop.permute.xlu1 %2208 }
 0x208   :  { %v2211_v34 = vunpack.i.h.bf16 %v2209_v32  ;;  %v2210_v35 = vunpack.i.l.bf16 %v2209_v32  ;;  %1997 = vmatprep.subr.bf16.mxu0 %v485_v31  ;;  %v782_v32 = vadd.s32 1, %v2840_v28 }
 0x209   :  { %1998 = vmatpush3.bf16.msra.mxu0 %v485_v31  ;;  %v781_v31 = vadd.s32 1, %v2837_v26  ;;  %2423 = vrot.lane.b32.xlu0 %v2462_v13, %s2460_s21 }
 0x20a   :  { %v463_v37 = vpack.c.bf16 %v2211_v34, %v2210_v35  ;;  %v2857_v34 = vmul.u32 2, %v654_v29  ;;  %v2859_v35 = vmul.u32 2, %v655_v30  ;;  %vm810_vm8 = vcmp.eq.s32.totalorder %v2769_v55, %v782_v32  ;;  %v1077_v29 = vld [vmem:[%s3373_s7 + $0x10] sm:$0xff] }
 0x20b   :  { %v2204_v38 = vpop.permute.xlu0 %2203  ;;  %v2219_v42 = vpop.permute.xlu1 %2218 }
 0x20c   :  { %v2206_v40 = vunpack.i.h.bf16 %v2204_v38  ;;  %v2205_v41 = vunpack.i.l.bf16 %v2204_v38  ;;  %1981 = vmatprep.subr.bf16.mxu1 %v463_v37  ;;  %v2221_v49 = vunpack.i.h.bf16 %v2219_v42  ;;  %v2220_v50 = vunpack.i.l.bf16 %v2219_v42 }
 0x20d   :  { %1982 = vmatpush3.bf16.msra.mxu1 %v463_v37  ;;  %v783_v37 = vadd.s32 1, %v2857_v34  ;;  %v784_v38 = vadd.s32 1, %v2859_v35 }
 0x20e   :  { %v486_v43 = vpack.c.bf16 %v2206_v40, %v2205_v41  ;;  %v465_v63 = vpack.c.bf16 %v2221_v49, %v2220_v50  ;;  %v657_v40 = vadd.s32 120, %v2757_v33  ;;  %v673_v41 = vmul.u32 2, %v656_v39 }
 0x20f   :  { %v2214_v44 = vpop.permute.xlu0 %2213 }
 0x210   :  { %v2216_v52 = vunpack.i.h.bf16 %v2214_v44  ;;  %v2215_v53 = vunpack.i.l.bf16 %v2214_v44  ;;  %1999 = vmatprep.subr.bf16.mxu0 %v486_v43  ;;  %v674_v42 = vmul.u32 2, %v657_v40 }
 0x211   :  { %2000 = vmatpush3.bf16.msra.mxu0 %v486_v43  ;;  %v785_v43 = vadd.s32 1, %v673_v41 }
 0x212   :  { %v464_v54 = vpack.c.bf16 %v2216_v52, %v2215_v53  ;;  %2001 = vmatprep.subr.bf16.mxu0 %v2677_v27  ;;  %v786_v44 = vadd.s32 1, %v674_v42 }
 0x213   :  { %v2224_v57 = vpop.permute.xlu0 %2223 }
 0x214   :  { %v2226_v2 = vunpack.i.h.bf16 %v2224_v57  ;;  %v2225_v3 = vunpack.i.l.bf16 %v2224_v57  ;;  %1983 = vmatprep.subr.bf16.mxu1 %v464_v54 }
 0x215   :  { %1984 = vmatpush3.bf16.msra.mxu1 %v464_v54  ;;  %2002 = vmatpush3.bf16.msra.mxu0 %v2677_v27  ;;  %v650_v27 = vadd.s32 64, %v2757_v33 }
 0x216   :  { %1985 = vmatprep.subr.bf16.mxu1 %v465_v63  ;;  %2003 = vmatprep.subr.bf16.mxu0 %v2680_v36  ;;  %v466_v8 = vpack.c.bf16 %v2226_v2, %v2225_v3 }
 0x217   :  { %v2815_v21 = vmul.u32 2, %v650_v27 }
 0x219   :  { %1986 = vmatpush3.bf16.msra.mxu1 %v465_v63  ;;  %2004 = vmatpush3.bf16.msra.mxu0 %v2680_v36  ;;  %v2444_v36 = vld [vmem:[%s3371_s3 + $0x8] sm:$0xff]   ;;  %v779_v25 = vadd.s32 1, %v2815_v21 }
 0x21a   :  { %1987 = vmatprep.subr.bf16.mxu1 %v466_v8  ;;  %2005 = vmatprep.subr.bf16.mxu0 %v2692_v58 }
 0x21b   :  { %vm803_vm5 = vcmp.eq.s32.totalorder %v2666_v51, %v779_v25 }
 0x21c   :  { %v2923_v54 = vpop.permute.xlu1 %497 }
 0x21d   :  { %1988 = vmatpush3.bf16.msra.mxu1 %v466_v8  ;;  %2006 = vmatpush3.bf16.msra.mxu0 %v2692_v58  ;;  %v2446_v58 = vld [vmem:[%s3372_s4 + $0x8] sm:$0xff]  }
 0x21e   :  { %2007 = vmatprep.subr.bf16.mxu0 %v2702_v0  ;;  %2014 = vmatprep.subr.msk.bf16.mxu1 %vm2013_vm12, %v2463_v18  ;;  %vm802_vm12 = vcmp.eq.s32.totalorder %v2769_v55, %v778_v23 }
 0x21f   :  { %vm2025_vm14 = vmpackc.low %vm802_vm12, %vm800_vm11  ;;  %vm807_vm11 = vcmp.eq.s32.totalorder %v2666_v51, %v781_v31  ;;  %vm809_vm12 = vcmp.eq.s32.totalorder %v2666_v51, %v782_v32 }
 0x220   :  { %1990 = vmatmul.mubr.bf16.vlgmr.msra.gmra.mrb[8].mxu1 %v2444_v36 }
 0x221   :  { %2008 = vmatpush3.bf16.msra.mxu0 %v2702_v0  ;;  %2016 = vmatpush1.bf16.msk.msra.mxu1 %vm2015_vm1, %v2463_v18  ;;  %v780_v0 = vadd.s32 1, %v2817_v22  ;;  %vm804_vm1 = vcmp.eq.s32.totalorder %v2769_v55, %v779_v25 }
 0x222   :  { %2018 = vmatprep.subr.msk.bf16.mxu1 %vm2017_vm3, %v2463_v18  ;;  %947 = vmatprep.mubr.f32.mxu1 %v2462_v13  ;;  %vm2027_vm3 = vmpackc.low %vm801_vm0, %vm799_vm15 }
 0x223   :  { %vm806_vm2 = vcmp.eq.s32.totalorder %v2769_v55, %v780_v0  ;;  %vm805_vm6 = vcmp.eq.s32.totalorder %v2666_v51, %v780_v0  ;;  %vm2035_vm15 = vmpackc.low %vm809_vm12, %vm807_vm11  ;;  %vm678_vm11 = vcmp.eq.s32.totalorder %v2769_v55, %v2763_v47 }
 0x224   :  { %2010 = vmatmul.mubr.bf16.vlgmr.msra.gmra.mrb[16].mxu0 %v2446_v58  ;;  %vm2029_vm4 = vmpackc.low %vm806_vm2, %vm804_vm1  ;;  %vm811_vm1 = vcmp.eq.s32.totalorder %v2666_v51, %v783_v37  ;;  %vm813_vm2 = vcmp.eq.s32.totalorder %v2666_v51, %v784_v38 }
 0x225   :  { %2020 = vmatpush1.bf16.msk.msra.mxu1 %vm2019_vm7, %v2463_v18  ;;  %1425 = vmatprep.mubr.bf16.mxu0 %v2461_v14  ;;  %vm808_vm7 = vcmp.eq.s32.totalorder %v2769_v55, %v781_v31  ;;  %vm2031_vm9 = vmpackc.low %vm805_vm6, %vm803_vm5  ;;  %vm818_vm5 = vcmp.eq.s32.totalorder %v2769_v55, %v786_v44 }
 0x226   :  { %2022 = vmatprep.subr.msk.bf16.mxu1 %vm2021_vm10, %v2463_v18  ;;  %vm2033_vm10 = vmpackc.low %vm810_vm8, %vm808_vm7  ;;  %vm815_vm7 = vcmp.eq.s32.totalorder %v2666_v51, %v785_v43  ;;  %vm817_vm8 = vcmp.eq.s32.totalorder %v2666_v51, %v786_v44 }
 0x229   :  { %2024 = vmatpush1.bf16.msk.msra.mxu1 %vm2023_vm13, %v2463_v18  ;;  %vm812_vm13 = vcmp.eq.s32.totalorder %v2769_v55, %v783_v37 }
 0x22a   :  { %2026 = vmatprep.subr.msk.bf16.mxu1 %vm2025_vm14, %v2463_v18  ;;  %vm814_vm14 = vcmp.eq.s32.totalorder %v2769_v55, %v784_v38 }
 0x22b   :  { %vm2037_vm0 = vmpackc.low %vm814_vm14, %vm812_vm13  ;;  %vm704_vm13 = vcmp.eq.s32.totalorder %v2769_v55, %v673_v41  ;;  %vm706_vm14 = vcmp.eq.s32.totalorder %v2769_v55, %v674_v42 }
 0x22d   :  { %2028 = vmatpush1.bf16.msk.msra.mxu1 %vm2027_vm3, %v2463_v18  ;;  %vm2039_vm3 = vmpackc.low %vm813_vm2, %vm811_vm1  ;;  %vm705_vm1 = vcmp.eq.s32.totalorder %v2666_v51, %v674_v42 }
 0x22e   :  { %2030 = vmatprep.subr.msk.bf16.mxu1 %vm2029_vm4, %v2463_v18  ;;  %vm816_vm4 = vcmp.eq.s32.totalorder %v2769_v55, %v785_v43 }
 0x22f   :  { %vm2041_vm6 = vmpackc.low %vm818_vm5, %vm816_vm4  ;;  %vm677_vm4 = vcmp.eq.s32.totalorder %v2666_v51, %v2763_v47  ;;  %vm680_vm5 = vcmp.eq.s32.totalorder %v2769_v55, %v2773_v60 }
 0x231   :  { %2032 = vmatpush1.bf16.msk.msra.mxu1 %vm2031_vm9, %v2463_v18  ;;  %vm2043_vm9 = vmpackc.low %vm817_vm8, %vm815_vm7 }
 0x232   :  { %2034 = vmatprep.subr.msk.bf16.mxu1 %vm2033_vm10, %v2463_v18  ;;  %vm676_vm10 = vcmp.eq.s32.totalorder %v2769_v55, %v2761_v45 }
 0x233   :  { %vm2045_vm12 = vmpackc.low %vm678_vm11, %vm676_vm10  ;;  %vm681_vm10 = vcmp.eq.s32.totalorder %v2666_v51, %v2775_v61  ;;  %vm684_vm11 = vcmp.eq.s32.totalorder %v2769_v55, %v2784_v7 }
 0x235   :  { %2036 = vmatpush1.bf16.msk.msra.mxu1 %vm2035_vm15, %v2463_v18  ;;  %vm2897_vm15 = vmpackc.low %vm706_vm14, %vm704_vm13 }
 0x236   :  { %2038 = vmatprep.subr.msk.bf16.mxu1 %vm2037_vm0, %v2463_v18  ;;  %vm703_vm0 = vcmp.eq.s32.totalorder %v2666_v51, %v673_v41 }
 0x237   :  { %vm2903_vm2 = vmpackc.low %vm705_vm1, %vm703_vm0  ;;  %vm683_vm0 = vcmp.eq.s32.totalorder %v2666_v51, %v2784_v7  ;;  %vm685_vm1 = vcmp.eq.s32.totalorder %v2666_v51, %v2789_v10 }
 0x239   :  { %2040 = vmatpush1.bf16.msk.msra.mxu1 %vm2039_vm3, %v2463_v18  ;;  %vm675_vm3 = vcmp.eq.s32.totalorder %v2666_v51, %v2761_v45  ;;  %v503_v45 = vpop.permute.xlu0 %502 }
 0x23a   :  { %2042 = vmatprep.subr.msk.bf16.mxu1 %vm2041_vm6, %v2463_v18  ;;  %vm682_vm6 = vcmp.eq.s32.totalorder %v2769_v55, %v2775_v61  ;;  %vm2047_vm7 = vmpackc.low %vm677_vm4, %vm675_vm3  ;;  %vm688_vm3 = vcmp.eq.s32.totalorder %v2769_v55, %v2798_v15  ;;  %vm690_vm4 = vcmp.eq.s32.totalorder %v2769_v55, %v2806_v17 }
 0x23b   :  { %vm2049_vm8 = vmpackc.low %vm682_vm6, %vm680_vm5 }
 0x23c   :  { %vm2055_vm5 = vmpackc.low %vm685_vm1, %vm683_vm0  ;;  %vm696_vm0 = vcmp.eq.s32.totalorder %v2769_v55, %v2837_v26  ;;  %vm698_vm1 = vcmp.eq.s32.totalorder %v2769_v55, %v2840_v28 }
 0x23d   :  { %2044 = vmatpush1.bf16.msk.msra.mxu1 %vm2043_vm9, %v2463_v18  ;;  %vm679_vm9 = vcmp.eq.s32.totalorder %v2666_v51, %v2773_v60  ;;  %v508_v60 = vpop.permute.xlu1 %507  ;;  %vm2057_vm6 = vmpackc.low %vm690_vm4, %vm688_vm3  ;;  %v513_v63 = vpop.permute.xlu0 %512 }
 0x23e   :  { %2046 = vmatprep.subr.msk.bf16.mxu1 %vm2045_vm12, %v2463_v18  ;;  %vm686_vm12 = vcmp.eq.s32.totalorder %v2769_v55, %v2789_v10  ;;  %vm2051_vm13 = vmpackc.low %vm681_vm10, %vm679_vm9  ;;  %vm692_vm9 = vcmp.eq.s32.totalorder %v2769_v55, %v2815_v21  ;;  %vm694_vm10 = vcmp.eq.s32.totalorder %v2769_v55, %v2817_v22 }
 0x23f   :  { %vm2053_vm14 = vmpackc.low %vm686_vm12, %vm684_vm11 }
 0x240   :  { %vm2061_vm12 = vmpackc.low %vm694_vm10, %vm692_vm9 }
 0x241   :  { %vm2065_vm4 = vmpackc.low %vm698_vm1, %vm696_vm0  ;;  %v2229_v30 = vpop.permute.xlu0 %2228 }
 0x242   :  { %v2231_v31 = vunpack.i.h.bf16 %v2229_v30  ;;  %v2230_v32 = vunpack.i.l.bf16 %v2229_v30 }
 0x245   :  { %v2244_v44 = vpop.permute.xlu0 %2243 }
 0x246   :  { %v2246_v33 = vunpack.i.h.bf16 %v2244_v44  ;;  %v2245_v46 = vunpack.i.l.bf16 %v2244_v44 }
 0x2f3   :  { %v2907_v48 = vpop.f32.mrb[8].mxu1 }
 0x2f4   :  { %v2909_v49 = vpop.f32.mrb[9].mxu1  ;;  %v570_v4 = vadd.f32 %v2907_v48, %v508_v60 }
 0x2f5   :  { %v2911_v50 = vpop.f32.mrb[10].mxu1 }
 0x2f6   :  { %v2913_v52 = vpop.f32.mrb[11].mxu1  ;;  %v573_v5 = vadd.f32 %v2911_v50, %v513_v63 }
 0x2f7   :  { %v2011_v53 = vpop.f32.mrb[16].mxu0  ;;  %v565_v3 = vadd.f32 %v2913_v52, %v503_v45  ;;  %v2254_v52 = vpop.permute.xlu0 %2253 }
 0x2f8   :  { %v626_v56 = vpop.f32.mrb[17].mxu0  ;;  %v635_v61 = vadd.f32 %v2011_v53, %v508_v60  ;;  %v2255_v60 = vunpack.i.l.bf16 %v2254_v52 }
 0x2f9   :  { %v627_v57 = vadd.f32 %v626_v56, %v2923_v54  ;;  %v2012_v59 = vpop.f32.mrb[18].mxu0 }
 0x2fa   :  { %v629_v62 = vpop.f32.mrb[19].mxu0  ;;  %v638_v2 = vadd.f32 %v2012_v59, %v513_v63 }
 0x2fb   :  { %948 = vmatmul.mubr.f32.vlgmr.msra.gmra.mrb[12].mxu1 %v627_v57  ;;  %v630_v47 = vadd.f32 %v629_v62, %v503_v45 }
 0x2fc   :  { %2048 = vmatpush1.bf16.msk.msra.mxu1 %vm2047_vm7, %v2463_v18  ;;  %953 = vmatprep.mubr.f32.mxu1 %v2462_v13  ;;  %vm687_vm7 = vcmp.eq.s32.totalorder %v2666_v51, %v2798_v15 }
 0x2fd   :  { %2050 = vmatprep.subr.msk.bf16.mxu1 %vm2049_vm8, %v2463_v18  ;;  %vm689_vm8 = vcmp.eq.s32.totalorder %v2666_v51, %v2806_v17 }
 0x2fe   :  { %vm2059_vm11 = vmpackc.low %vm689_vm8, %vm687_vm7  ;;  %vm700_vm7 = vcmp.eq.s32.totalorder %v2769_v55, %v2857_v34  ;;  %vm702_vm8 = vcmp.eq.s32.totalorder %v2769_v55, %v2859_v35  ;;  %v562_v55 = vadd.f32 %v2909_v49, %v2923_v54 }
 0x2ff   :  { %954 = vmatmul.mubr.f32.gmra.mrb[14].mxu1 %v630_v47  ;;  %vm2069_vm10 = vmpackc.low %vm702_vm8, %vm700_vm7  ;;  %v2256_v47 = vunpack.i.h.bf16 %v2254_v52 }
 0x300   :  { %2052 = vmatpush1.bf16.msk.msra.mxu1 %vm2051_vm13, %v2463_v18  ;;  %959 = vmatprep.mubr.f32.mxu1 %v2462_v13  ;;  %vm691_vm13 = vcmp.eq.s32.totalorder %v2666_v51, %v2815_v21 }
 0x301   :  { %2054 = vmatprep.subr.msk.bf16.mxu1 %vm2053_vm14, %v2463_v18  ;;  %vm693_vm14 = vcmp.eq.s32.totalorder %v2666_v51, %v2817_v22 }
 0x302   :  { %vm2063_vm3 = vmpackc.low %vm693_vm14, %vm691_vm13 }
 0x303   :  { %960 = vmatmul.mubr.f32.gmra.mrb[16].mxu1 %v635_v61 }
 0x304   :  { %2056 = vmatpush1.bf16.msk.msra.mxu1 %vm2055_vm5, %v2463_v18  ;;  %965 = vmatprep.mubr.f32.mxu1 %v2462_v13  ;;  %vm695_vm5 = vcmp.eq.s32.totalorder %v2666_v51, %v2837_v26 }
 0x305   :  { %2058 = vmatprep.subr.msk.bf16.mxu1 %vm2057_vm6, %v2463_v18  ;;  %vm697_vm6 = vcmp.eq.s32.totalorder %v2666_v51, %v2840_v28  ;;  %v1075_v28 = vld [vmem:[%s3373_s7] sm:$0xff] }
 0x306   :  { %vm2067_vm9 = vmpackc.low %vm697_vm6, %vm695_vm5  ;;  %vm1195_vm5 = vcmask 785408  }
 0x307   :  { %966 = vmatmul.mubr.f32.gmra.mrb[18].mxu1 %v638_v2 }
 0x308   :  { %2060 = vmatpush1.bf16.msk.msra.mxu1 %vm2059_vm11, %v2463_v18  ;;  %1036 = vmatprep.mubr.f32.mxu1 %v2462_v13  ;;  %vm699_vm11 = vcmp.eq.s32.totalorder %v2666_v51, %v2857_v34 }
 0x309   :  { %2062 = vmatprep.subr.msk.bf16.mxu1 %vm2061_vm12, %v2463_v18  ;;  %vm701_vm12 = vcmp.eq.s32.totalorder %v2666_v51, %v2859_v35 }
 0x30a   :  { %vm2071_vm13 = vmpackc.low %vm701_vm12, %vm699_vm11  ;;  %vm1336_vm11 = vcmp.lt.s32.totalorder %v2666_v51, 127 }
 0x30c   :  { %2064 = vmatpush1.bf16.msk.msra.mxu1 %vm2063_vm3, %v2463_v18  ;;  %vm1119_vm3 = vcmp.lt.s32.totalorder %v2666_v51, 3 }
 0x30d   :  { %2066 = vmatprep.subr.msk.bf16.mxu1 %vm2065_vm4, %v2463_v18  ;;  %vm1144_vm4 = vcmp.lt.s32.totalorder %v2666_v51, 125 }
 0x310   :  { %2068 = vmatpush1.bf16.msk.msra.mxu1 %vm2067_vm9, %v2463_v18 }
 0x311   :  { %2070 = vmatprep.subr.msk.bf16.mxu1 %vm2069_vm10, %v2463_v18  ;;  %vm1311_vm10 = vcmp.lt.s32.totalorder %v2666_v51, 1 }
 0x314   :  { %2072 = vmatpush1.bf16.msk.msra.mxu1 %vm2071_vm13, %v2463_v18 }
 0x315   :  { %2074 = vmatprep.subr.msk.bf16.mxu1 %vm2897_vm15, %v2463_v18  ;;  %vm1061_vm15 = vcmp.lt.s32.totalorder %v2666_v51, 32 }
 0x318   :  { %2076 = vmatpush1.bf16.msk.msra.mxu1 %vm2903_vm2, %v2463_v18 }
 0x31b   :  { %1037 = vmatmul.mubr.f32.vlgmr.msra.gmra.mrb[12].mxu1 %v562_v55  ;;  %v2464_v55 = vmov 0.0|0.0  }
 0x31c   :  { %1042 = vmatprep.mubr.f32.mxu1 %v2462_v13 }
 0x31f   :  { %1043 = vmatmul.mubr.f32.gmra.mrb[14].mxu1 %v565_v3  ;;  %v2264_v3 = vpop.permute.xlu0 %2263 }
 0x320   :  { %1048 = vmatprep.mubr.f32.mxu1 %v2462_v13 }
 0x323   :  { %1049 = vmatmul.mubr.f32.gmra.mrb[16].mxu1 %v570_v4  ;;  %v2266_v4 = vunpack.i.h.bf16 %v2264_v3 }
 0x324   :  { %1054 = vmatprep.mubr.f32.mxu1 %v2462_v13 }
 0x327   :  { %1055 = vmatmul.mubr.f32.gmra.mrb[18].mxu1 %v573_v5  ;;  %v2265_v5 = vunpack.i.l.bf16 %v2264_v3 }
 0x328   :  { %1234 = vmatprep.mubr.bf16.mxu1 %v2461_v14 }
 0x3ee   :  { %v1038_v6 = vpop.f32.mrb[12].mxu1 }
 0x3ef   :  { %v3005_v7 = vsel %vm1061_vm15, %v1038_v6, 0.0  ;;  %v1040_v1 = vpop.f32.mrb[13].mxu1 }
 0x3f0   :  { %v1087_v8 = vmul.f32 0.1, %v3005_v7  ;;  %vm1079_vm2 = vcmp.ge.f32.partialorder %v3005_v7, 0.0 }
 0x3f2   :  { %v1044_v9 = vpop.f32.mrb[14].mxu1  ;;  %v3016_v12 = vsel %vm1079_vm2, %v3005_v7, %v1087_v8 }
 0x3f3   :  { %v3011_v10 = vsel %vm1061_vm15, %v1044_v9, 0.0  ;;  %v1046_v27 = vpop.f32.mrb[15].mxu1 }
 0x3f4   :  { %vm1081_vm14 = vcmp.ge.f32.partialorder %v3011_v10, 0.0  ;;  %v1089_v11 = vmul.f32 0.1, %v3011_v10 }
 0x3f6   :  { %v3019_v15 = vsel %vm1081_vm14, %v3011_v10, %v1089_v11  ;;  %v1050_v36 = vpop.f32.mrb[16].mxu1 }
 0x3f7   :  { %v1157_v16 = vpack.c.bf16 %v3019_v15, %v3016_v12  ;;  %v3025_v17 = vsel %vm1061_vm15, %v1050_v36, 0.0  ;;  %v1052_v18 = vpop.f32.mrb[17].mxu1  ;;  %v2232_v19 = vpack.i.bf16 %v3019_v15, %v3016_v12 }
 0x3f8   :  { %v1091_v20 = vmul.f32 0.1, %v3025_v17  ;;  %vm1083_vm0 = vcmp.ge.f32.partialorder %v3025_v17, 0.0 }
 0x3f9   :  { %2233 = vrot.lane.b32.xlu1 %v2232_v19, %s2456_s16 }
 0x3fa   :  { %v1056_v21 = vpop.f32.mrb[18].mxu1  ;;  %v3039_v24 = vsel %vm1083_vm0, %v3025_v17, %v1091_v20  ;;  %vm1528_vm0 = vcmp.lt.s32.totalorder %v2666_v51, 2 }
 0x3fb   :  { %v3034_v22 = vsel %vm1061_vm15, %v1056_v21, 0.0  ;;  %v1058_v58 = vpop.f32.mrb[19].mxu1 }
 0x3fc   :  { %vm1085_vm1 = vcmp.ge.f32.partialorder %v3034_v22, 0.0  ;;  %v1093_v23 = vmul.f32 0.1, %v3034_v22  ;;  %v2447_v58 = vld [vmem:[%s3375_s6] sm:$0xff]  }
 0x3fe   :  { %v1101_v25 = vsel %vm1085_vm1, %v3034_v22, %v1093_v23  ;;  %v2448_v23 = vld [vmem:[%s3375_s6 + $0x8] sm:$0xff]   ;;  %vm1601_vm1 = vcmp.lt.s32.totalorder %v2666_v51, 126 }
 0x3ff   :  { %v1159_v0 = vpack.c.bf16 %v1101_v25, %v3039_v24  ;;  %v2237_v26 = vpack.i.bf16 %v1101_v25, %v3039_v24 }
 0x401   :  { %2238 = vrot.lane.b32.xlu1 %v2237_v26, %s2456_s16 }
 0x405   :  { %2248 = vrot.lane.b32.xlu1 %v2232_v19, %s2460_s21 }
 0x409   :  { %2258 = vrot.lane.b32.xlu1 %v2237_v26, %s2460_s21 }
 0x40d   :  { %1167 = vperm.xlu1 %2186, %v1075_v28   ;;  %v1173_v28 = vpop.permute.xlu0 %1172 }
 0x411   :  { %1177 = vperm.xlu1 %2186, %v1077_v29  }
 0x46b   :  { %v2234_v34 = vpop.permute.xlu1 %2233 }
 0x46c   :  { %v2236_v35 = vunpack.i.h.bf16 %v2234_v34  ;;  %v2235_v37 = vunpack.i.l.bf16 %v2234_v34 }
 0x46e   :  { %v1125_v38 = vsel %vm1119_vm3, %v2231_v31, %v2236_v35  ;;  %v1124_v39 = vsel %vm1119_vm3, %v2230_v32, %v2235_v37  ;;  %v1120_v40 = vsel %vm1119_vm3, %v2235_v37, %v2230_v32  ;;  %v1121_v41 = vsel %vm1119_vm3, %v2236_v35, %v2231_v31 }
 0x46f   :  { %v1153_v42 = vpack.c.bf16 %v1125_v38, %v1124_v39  ;;  %v1154_v43 = vpack.c.bf16 %v1121_v41, %v1120_v40 }
 0x471   :  { %1202 = vmatprep.subr.bf16.mxu1 %v1154_v43 }
 0x472   :  { %1203 = vmatpush1.bf16.msra.mxu1 %v1153_v42 }
 0x473   :  { %v2239_v48 = vpop.permute.xlu1 %2238 }
 0x474   :  { %v2241_v49 = vunpack.i.h.bf16 %v2239_v48  ;;  %v2240_v50 = vunpack.i.l.bf16 %v2239_v48 }
 0x476   :  { %v1127_v53 = vsel %vm1119_vm3, %v2246_v33, %v2241_v49  ;;  %v1126_v54 = vsel %vm1119_vm3, %v2245_v46, %v2240_v50  ;;  %v1122_v56 = vsel %vm1119_vm3, %v2240_v50, %v2245_v46  ;;  %v1123_v57 = vsel %vm1119_vm3, %v2241_v49, %v2246_v33  ;;  %v1183_v46 = vpop.permute.xlu0 %1182 }
 0x477   :  { %v1155_v59 = vpack.c.bf16 %v1127_v53, %v1126_v54  ;;  %v2249_v62 = vpop.permute.xlu1 %2248  ;;  %v1156_v45 = vpack.c.bf16 %v1123_v57, %v1122_v56 }
 0x478   :  { %v2251_v61 = vunpack.i.h.bf16 %v2249_v62  ;;  %v2250_v63 = vunpack.i.l.bf16 %v2249_v62 }
 0x479   :  { %1204 = vmatprep.subr.bf16.mxu1 %v1156_v45 }
 0x47a   :  { %1205 = vmatpush1.bf16.msra.mxu1 %v1155_v59  ;;  %v1149_v8 = vsel %vm1144_vm4, %v2255_v60, %v2250_v63  ;;  %v1150_v9 = vsel %vm1144_vm4, %v2256_v47, %v2251_v61  ;;  %v1146_v27 = vsel %vm1144_vm4, %v2251_v61, %v2256_v47  ;;  %v1145_v11 = vsel %vm1144_vm4, %v2250_v63, %v2255_v60  ;;  %v1267_v47 = vld [vmem:[%s3374_s9] sm:$0xff]  ;;  %v1269_v60 = vld [vmem:[%s3374_s9 + $0x10] sm:$0xff]  ;;  %v2269_v61 = vpop.permute.xlu0 %2268 }
 0x47b   :  { %v2259_v2 = vpop.permute.xlu1 %2258  ;;  %1206 = vmatprep.subr.bf16.mxu1 %v2464_v55  ;;  %v1162_v36 = vpack.c.bf16 %v1150_v9, %v1149_v8  ;;  %v2271_v63 = vunpack.i.h.bf16 %v2269_v61 }
 0x47c   :  { %v2261_v6 = vunpack.i.h.bf16 %v2259_v2  ;;  %v2260_v1 = vunpack.i.l.bf16 %v2259_v2  ;;  %v2270_v2 = vunpack.i.l.bf16 %v2269_v61 }
 0x47e   :  { %1207 = vmatpush1.bf16.msra.mxu1 %v1157_v16  ;;  %v1151_v12 = vsel %vm1144_vm4, %v2265_v5, %v2260_v1  ;;  %v1152_v15 = vsel %vm1144_vm4, %v2266_v4, %v2261_v6  ;;  %v1161_v16 = vpack.c.bf16 %v1146_v27, %v1145_v11  ;;  %v1148_v18 = vsel %vm1144_vm4, %v2261_v6, %v2266_v4 }
 0x47f   :  { %1208 = vmatprep.subr.bf16.mxu1 %v2464_v55  ;;  %v1147_v19 = vsel %vm1144_vm4, %v2260_v1, %v2265_v5  ;;  %v1164_v20 = vpack.c.bf16 %v1152_v15, %v1151_v12 }
 0x480   :  { %v1163_v21 = vpack.c.bf16 %v1148_v18, %v1147_v19 }
 0x482   :  { %1209 = vmatpush1.bf16.msra.mxu1 %v1159_v0 }
 0x483   :  { %1210 = vmatprep.subr.bf16.mxu1 %v1162_v36  ;;  %v2284_v36 = vpop.permute.xlu0 %2283 }
 0x484   :  { %v2286_v12 = vunpack.i.h.bf16 %v2284_v36  ;;  %v2285_v15 = vunpack.i.l.bf16 %v2284_v36 }
 0x486   :  { %1211 = vmatpush1.bf16.msra.mxu1 %v1161_v16 }
 0x487   :  { %1212 = vmatprep.subr.bf16.mxu1 %v1164_v20  ;;  %v2294_v20 = vpop.permute.xlu0 %2293 }
 0x48a   :  { %1213 = vmatpush1.bf16.msra.mxu1 %v1163_v21 }
 0x48c   :  { %v1168_v24 = vpop.permute.xlu1 %1167 }
 0x48d   :  { %1877 = vmatmul.mubr.msk.bf16.vlgmr.msra.gmra.mrb[20].mxu1 %vm1195_vm5, %v2447_v58 }
 0x48e   :  { %1244 = vmatprep.mubr.bf16.mxu1 %v2461_v14 }
 0x490   :  { %v1178_v38 = vpop.permute.xlu1 %1177 }
 0x495   :  { %1878 = vmatmul.mubr.msk.bf16.gmra.mrb[24].mxu1 %vm1195_vm5, %v2448_v23 }
 0x560   :  { %v1236_v25 = vpop.f32.mrb[20].mxu1 }
 0x561   :  { %v1237_v0 = vadd.f32 %v1236_v25, %v1168_v24  ;;  %v1238_v26 = vpop.f32.mrb[21].mxu1 }
 0x562   :  { %v1240_v29 = vpop.f32.mrb[22].mxu1 }
 0x563   :  { %v1255_v30 = vsel %vm1061_vm15, %v1237_v0, 0.0  ;;  %v1241_v31 = vadd.f32 %v1240_v29, %v1173_v28  ;;  %v1242_v32 = vpop.f32.mrb[23].mxu1  ;;  %v2296_v28 = vunpack.i.h.bf16 %v2294_v20  ;;  %v2295_v29 = vunpack.i.l.bf16 %v2294_v20 }
 0x564   :  { %v1279_v34 = vmul.f32 0.1, %v1255_v30  ;;  %vm1271_vm6 = vcmp.ge.f32.partialorder %v1255_v30, 0.0 }
 0x565   :  { %v1257_v35 = vsel %vm1061_vm15, %v1241_v31, 0.0 }
 0x566   :  { %vm1273_vm7 = vcmp.ge.f32.partialorder %v1257_v35, 0.0  ;;  %v1281_v37 = vmul.f32 0.1, %v1257_v35  ;;  %v3105_v39 = vsel %vm1271_vm6, %v1255_v30, %v1279_v34  ;;  %v2304_v34 = vpop.permute.xlu0 %2303 }
 0x568   :  { %v3107_v40 = vsel %vm1273_vm7, %v1257_v35, %v1281_v37  ;;  %v1246_v41 = vpop.f32.mrb[24].mxu1  ;;  %v2306_v35 = vunpack.i.h.bf16 %v2304_v34  ;;  %v2305_v37 = vunpack.i.l.bf16 %v2304_v34 }
 0x569   :  { %v1349_v42 = vpack.c.bf16 %v3107_v40, %v3105_v39  ;;  %v1247_v43 = vadd.f32 %v1246_v41, %v1178_v38  ;;  %v1248_v44 = vpop.f32.mrb[25].mxu1  ;;  %v2272_v33 = vpack.i.bf16 %v3107_v40, %v3105_v39 }
 0x56a   :  { %v1250_v48 = vpop.f32.mrb[26].mxu1 }
 0x56b   :  { %v1259_v49 = vsel %vm1061_vm15, %v1247_v43, 0.0  ;;  %v1251_v50 = vadd.f32 %v1250_v48, %v1183_v46  ;;  %v1252_v52 = vpop.f32.mrb[27].mxu1  ;;  %2273 = vrot.lane.b32.xlu1 %v2272_v33, %s2455_s15 }
 0x56c   :  { %v1283_v53 = vmul.f32 0.1, %v1259_v49  ;;  %vm1275_vm8 = vcmp.ge.f32.partialorder %v1259_v49, 0.0 }
 0x56d   :  { %v1261_v54 = vsel %vm1061_vm15, %v1251_v50, 0.0 }
 0x56e   :  { %vm1277_vm9 = vcmp.ge.f32.partialorder %v1261_v54, 0.0  ;;  %v1285_v56 = vmul.f32 0.1, %v1261_v54  ;;  %v1291_v57 = vsel %vm1275_vm8, %v1259_v49, %v1283_v53 }
 0x570   :  { %v1293_v59 = vsel %vm1277_vm9, %v1261_v54, %v1285_v56  ;;  %v2449_v54 = vld [vmem:[%s3376_s8] sm:$0xff]   ;;  %v2450_v56 = vld [vmem:[%s3376_s8 + $0x8] sm:$0xff]  }
 0x571   :  { %v1351_v62 = vpack.c.bf16 %v1293_v59, %v1291_v57  ;;  %v2277_v45 = vpack.i.bf16 %v1293_v59, %v1291_v57 }
 0x573   :  { %2278 = vrot.lane.b32.xlu1 %v2277_v45, %s2455_s15 }
 0x577   :  { %2288 = vrot.lane.b32.xlu1 %v2272_v33, %s2458_s17 }
 0x57b   :  { %2298 = vrot.lane.b32.xlu1 %v2277_v45, %s2458_s17  ;;  %v1365_v45 = vpop.permute.xlu0 %1364 }
 0x57f   :  { %1359 = vperm.xlu1 %2186, %v1267_v47  }
 0x583   :  { %1369 = vperm.xlu1 %2186, %v1269_v60  }
 0x5dd   :  { %v2274_v3 = vpop.permute.xlu1 %2273 }
 0x5de   :  { %v2276_v4 = vunpack.i.h.bf16 %v2274_v3  ;;  %v2275_v5 = vunpack.i.l.bf16 %v2274_v3 }
 0x5e0   :  { %v1317_v6 = vsel %vm1311_vm10, %v2271_v63, %v2276_v4  ;;  %v1316_v1 = vsel %vm1311_vm10, %v2270_v2, %v2275_v5  ;;  %v1312_v8 = vsel %vm1311_vm10, %v2275_v5, %v2270_v2  ;;  %v1313_v9 = vsel %vm1311_vm10, %v2276_v4, %v2271_v63 }
 0x5e1   :  { %v1345_v27 = vpack.c.bf16 %v1317_v6, %v1316_v1  ;;  %v1346_v11 = vpack.c.bf16 %v1313_v9, %v1312_v8 }
 0x5e3   :  { %1393 = vmatprep.subr.bf16.mxu0 %v1346_v11  ;;  %v1375_v11 = vpop.permute.xlu0 %1374 }
 0x5e4   :  { %1394 = vmatpush1.bf16.msra.mxu0 %v1345_v27 }
 0x5e5   :  { %v2279_v16 = vpop.permute.xlu1 %2278 }
 0x5e6   :  { %v2281_v18 = vunpack.i.h.bf16 %v2279_v16  ;;  %v2280_v19 = vunpack.i.l.bf16 %v2279_v16 }
 0x5e8   :  { %v1319_v21 = vsel %vm1311_vm10, %v2286_v12, %v2281_v18  ;;  %v1318_v58 = vsel %vm1311_vm10, %v2285_v15, %v2280_v19  ;;  %v1314_v23 = vsel %vm1311_vm10, %v2280_v19, %v2285_v15  ;;  %v1315_v24 = vsel %vm1311_vm10, %v2281_v18, %v2286_v12 }
 0x5e9   :  { %v1347_v25 = vpack.c.bf16 %v1319_v21, %v1318_v58  ;;  %v2289_v0 = vpop.permute.xlu1 %2288  ;;  %v1348_v26 = vpack.c.bf16 %v1315_v24, %v1314_v23 }
 0x5ea   :  { %v2291_v30 = vunpack.i.h.bf16 %v2289_v0  ;;  %v2290_v31 = vunpack.i.l.bf16 %v2289_v0 }
 0x5eb   :  { %1395 = vmatprep.subr.bf16.mxu0 %v1348_v26 }
 0x5ec   :  { %1396 = vmatpush1.bf16.msra.mxu0 %v1347_v25  ;;  %v1341_v43 = vsel %vm1336_vm11, %v2295_v29, %v2290_v31  ;;  %v1342_v44 = vsel %vm1336_vm11, %v2296_v28, %v2291_v30  ;;  %v1338_v33 = vsel %vm1336_vm11, %v2291_v30, %v2296_v28  ;;  %v1337_v46 = vsel %vm1336_vm11, %v2290_v31, %v2295_v29  ;;  %v3245_v28 = vld [vmem:[%s3378_s10] sm:$0xff]  ;;  %v2309_v30 = vpop.permute.xlu0 %2308 }
 0x5ed   :  { %v2299_v32 = vpop.permute.xlu1 %2298  ;;  %1397 = vmatprep.subr.bf16.mxu0 %v2464_v55  ;;  %v1354_v48 = vpack.c.bf16 %v1342_v44, %v1341_v43  ;;  %v1884_v29 = vcombine.high %v3245_v28, %v3245_v28 }
 0x5ee   :  { %v2301_v38 = vunpack.i.h.bf16 %v2299_v32  ;;  %v2300_v41 = vunpack.i.l.bf16 %v2299_v32 }
 0x5f0   :  { %1398 = vmatpush1.bf16.msra.mxu0 %v1349_v42  ;;  %v1343_v39 = vsel %vm1336_vm11, %v2305_v37, %v2300_v41  ;;  %v1344_v40 = vsel %vm1336_vm11, %v2306_v35, %v2301_v38  ;;  %v1353_v42 = vpack.c.bf16 %v1338_v33, %v1337_v46  ;;  %v1340_v49 = vsel %vm1336_vm11, %v2301_v38, %v2306_v35  ;;  %v2314_v31 = vpop.permute.xlu0 %2313 }
 0x5f1   :  { %1399 = vmatprep.subr.bf16.mxu0 %v2464_v55  ;;  %v1339_v50 = vsel %vm1336_vm11, %v2300_v41, %v2305_v37  ;;  %v1356_v52 = vpack.c.bf16 %v1344_v40, %v1343_v39  ;;  %v2311_v35 = vunpack.i.h.bf16 %v2309_v30  ;;  %v2310_v37 = vunpack.i.l.bf16 %v2309_v30 }
 0x5f2   :  { %v1355_v53 = vpack.c.bf16 %v1340_v49, %v1339_v50  ;;  %v2315_v49 = vunpack.i.l.bf16 %v2314_v31 }
 0x5f4   :  { %1400 = vmatpush1.bf16.msra.mxu0 %v1351_v62  ;;  %v2334_v32 = vpop.permute.xlu0 %2333 }
 0x5f5   :  { %1401 = vmatprep.subr.bf16.mxu0 %v1354_v48 }
 0x5f8   :  { %1402 = vmatpush1.bf16.msra.mxu0 %v1353_v42  ;;  %v2339_v34 = vpop.permute.xlu0 %2338  ;;  %v2316_v42 = vunpack.i.h.bf16 %v2314_v31 }
 0x5f9   :  { %1403 = vmatprep.subr.bf16.mxu0 %v1356_v52 }
 0x5fc   :  { %1404 = vmatpush1.bf16.msra.mxu0 %v1355_v53  ;;  %v2354_v40 = vpop.permute.xlu0 %2353 }
 0x5ff   :  { %1881 = vmatmul.mubr.msk.bf16.vlgmr.msra.gmra.mrb[20].mxu0 %vm1195_vm5, %v2449_v54  ;;  %v2336_v54 = vunpack.i.h.bf16 %v2334_v32 }
 0x600   :  { %1435 = vmatprep.mubr.bf16.mxu0 %v2461_v14  ;;  %v1360_v14 = vpop.permute.xlu1 %1359 }
 0x604   :  { %v1370_v6 = vpop.permute.xlu1 %1369 }
 0x607   :  { %1882 = vmatmul.mubr.msk.bf16.gmra.mrb[24].mxu0 %vm1195_vm5, %v2450_v56  ;;  %v2335_v56 = vunpack.i.l.bf16 %v2334_v32 }
 0x608   :  { %1885 = vmatprep.mubr.msk.bf16.mxu0 %vm1195_vm5, %v1884_v29 }
 0x6d2   :  { %v1427_v57 = vpop.f32.mrb[20].mxu0 }
 0x6d3   :  { %v1428_v59 = vadd.f32 %v1427_v57, %v1360_v14  ;;  %v1429_v62 = vpop.f32.mrb[21].mxu0  ;;  %v2364_v14 = vpop.permute.xlu0 %2363 }
 0x6d4   :  { %v1431_v47 = vpop.f32.mrb[22].mxu0  ;;  %v2366_v31 = vunpack.i.h.bf16 %v2364_v14  ;;  %v2365_v32 = vunpack.i.l.bf16 %v2364_v14 }
 0x6d5   :  { %v1446_v60 = vsel %vm1061_vm15, %v1428_v59, 0.0  ;;  %v1432_v61 = vadd.f32 %v1431_v47, %v1365_v45  ;;  %v1433_v63 = vpop.f32.mrb[23].mxu0 }
 0x6d6   :  { %v1454_v2 = vadd.f32 %v1446_v60, %v3005_v7 }
 0x6d7   :  { %v1448_v3 = vsel %vm1061_vm15, %v1432_v61, 0.0 }
 0x6d8   :  { %v1472_v4 = vmul.f32 0.1, %v1454_v2  ;;  %v1456_v5 = vadd.f32 %v1448_v3, %v3011_v10  ;;  %vm1464_vm12 = vcmp.ge.f32.partialorder %v1454_v2, 0.0  ;;  %v2341_v3 = vunpack.i.h.bf16 %v2339_v34 }
 0x6da   :  { %vm1466_vm13 = vcmp.ge.f32.partialorder %v1456_v5, 0.0  ;;  %v1474_v1 = vmul.f32 0.1, %v1456_v5  ;;  %v1437_v8 = vpop.f32.mrb[24].mxu0  ;;  %v3205_v36 = vsel %vm1464_vm12, %v1454_v2, %v1472_v4  ;;  %v2340_v4 = vunpack.i.l.bf16 %v2339_v34 }
 0x6db   :  { %v1438_v9 = vadd.f32 %v1437_v8, %v1370_v6  ;;  %v1439_v27 = vpop.f32.mrb[25].mxu0 }
 0x6dc   :  { %v3207_v12 = vsel %vm1466_vm13, %v1456_v5, %v1474_v1  ;;  %v1441_v15 = vpop.f32.mrb[26].mxu0 }
 0x6dd   :  { %v1450_v7 = vsel %vm1061_vm15, %v1438_v9, 0.0  ;;  %v1442_v16 = vadd.f32 %v1441_v15, %v1375_v11  ;;  %v1443_v18 = vpop.f32.mrb[27].mxu0  ;;  %v2317_v10 = vpack.i.bf16 %v3207_v12, %v3205_v36  ;;  %v1646_v23 = vpack.c.bf16 %v3207_v12, %v3205_v36  ;;  %v2374_v15 = vpop.permute.xlu0 %2373 }
 0x6de   :  { %v1458_v19 = vadd.f32 %v1450_v7, %v3025_v17  ;;  %v2356_v18 = vunpack.i.h.bf16 %v2354_v40 }
 0x6df   :  { %v1452_v20 = vsel %vm1061_vm15, %v1442_v16, 0.0  ;;  %2318 = vrot.lane.b32.xlu1 %v2317_v10, %s2456_s16 }
 0x6e0   :  { %v1476_v21 = vmul.f32 0.1, %v1458_v19  ;;  %v1460_v58 = vadd.f32 %v1452_v20, %v3034_v22  ;;  %vm1468_vm2 = vcmp.ge.f32.partialorder %v1458_v19, 0.0  ;;  %v1463_v22 = vld [vmem:[%s3377_s11] sm:$0xff] }
 0x6e1   :  { %v2379_v34 = vpop.permute.xlu0 %2378 }
 0x6e2   :  { %vm1470_vm14 = vcmp.ge.f32.partialorder %v1460_v58, 0.0  ;;  %v1478_v24 = vmul.f32 0.1, %v1460_v58  ;;  %v3220_v25 = vsel %vm1468_vm2, %v1458_v19, %v1476_v21 }
 0x6e4   :  { %v3222_v0 = vsel %vm1470_vm14, %v1460_v58, %v1478_v24 }
 0x6e5   :  { %v2322_v17 = vpack.i.bf16 %v3222_v0, %v3220_v25  ;;  %v1648_v26 = vpack.c.bf16 %v3222_v0, %v3220_v25 }
 0x6e7   :  { %2323 = vrot.lane.b32.xlu1 %v2322_v17, %s2456_s16 }
 0x6eb   :  { %2328 = vrot.lane.b32.xlu1 %v2317_v10, %s2457_s0 }
 0x6ef   :  { %2343 = vrot.lane.b32.xlu1 %v2322_v17, %s2457_s0 }
 0x6f3   :  { %2348 = vrot.lane.b32.xlu1 %v2317_v10, %s2455_s15 }
 0x6f7   :  { %2358 = vrot.lane.b32.xlu1 %v2322_v17, %s2455_s15 }
 0x6fb   :  { %2368 = vrot.lane.b32.xlu1 %v2317_v10, %s2458_s17 }
 0x6ff   :  { %2383 = vrot.lane.b32.xlu1 %v2322_v17, %s2458_s17 }
 0x703   :  { %2388 = vrot.lane.b32.xlu1 %v2317_v10, %s2459_s18 }
 0x707   :  { %2403 = vrot.lane.b32.xlu1 %v2322_v17, %s2459_s18 }
 0x70b   :  { %2408 = vrot.lane.b32.xlu1 %v2317_v10, %s2460_s21  ;;  %v2355_v10 = vunpack.i.l.bf16 %v2354_v40 }
 0x70f   :  { %2418 = vrot.lane.b32.xlu1 %v2322_v17, %s2460_s21 }
 0x713   :  { %1664 = vperm.xlu1 %2186, %v1463_v22  }
 0x751   :  { %v2319_v38 = vpop.permute.xlu1 %2318 }
 0x752   :  { %v2321_v41 = vunpack.i.h.bf16 %v2319_v38  ;;  %v2320_v43 = vunpack.i.l.bf16 %v2319_v38 }
 0x754   :  { %v1509_v44 = vsel %vm1119_vm3, %v2311_v35, %v2321_v41  ;;  %v1508_v33 = vsel %vm1119_vm3, %v2310_v37, %v2320_v43  ;;  %v1504_v46 = vsel %vm1119_vm3, %v2320_v43, %v2310_v37  ;;  %v1505_v13 = vsel %vm1119_vm3, %v2321_v41, %v2311_v35 }
 0x755   :  { %v1634_v48 = vpack.c.bf16 %v1509_v44, %v1508_v33  ;;  %v1635_v39 = vpack.c.bf16 %v1505_v13, %v1504_v46 }
 0x757   :  { %1676 = vmatprep.subr.bf16.mxu0 %v1635_v39 }
 0x758   :  { %1677 = vmatpush1.bf16.msra.mxu0 %v1634_v48 }
 0x759   :  { %v2324_v50 = vpop.permute.xlu1 %2323 }
 0x75a   :  { %v2326_v52 = vunpack.i.h.bf16 %v2324_v50  ;;  %v2325_v53 = vunpack.i.l.bf16 %v2324_v50 }
 0x75c   :  { %v1511_v57 = vsel %vm1119_vm3, %v2316_v42, %v2326_v52  ;;  %v1510_v59 = vsel %vm1119_vm3, %v2315_v49, %v2325_v53  ;;  %v1506_v62 = vsel %vm1119_vm3, %v2325_v53, %v2315_v49  ;;  %v1507_v45 = vsel %vm1119_vm3, %v2326_v52, %v2316_v42  ;;  %v2394_v53 = vpop.permute.xlu0 %2393 }
 0x75d   :  { %v1636_v47 = vpack.c.bf16 %v1511_v57, %v1510_v59  ;;  %v2329_v60 = vpop.permute.xlu1 %2328  ;;  %v1637_v61 = vpack.c.bf16 %v1507_v45, %v1506_v62  ;;  %v2381_v62 = vunpack.i.h.bf16 %v2379_v34  ;;  %v2380_v45 = vunpack.i.l.bf16 %v2379_v34 }
 0x75e   :  { %v2331_v63 = vunpack.i.h.bf16 %v2329_v60  ;;  %v2330_v2 = vunpack.i.l.bf16 %v2329_v60 }
 0x75f   :  { %1678 = vmatprep.subr.bf16.mxu0 %v1637_v61 }
 0x760   :  { %v1534_v5 = vsel %vm1528_vm0, %v2336_v54, %v2331_v63  ;;  %v1533_v6 = vsel %vm1528_vm0, %v2335_v56, %v2330_v2  ;;  %1679 = vmatpush1.bf16.msra.mxu0 %v1636_v47  ;;  %v1529_v1 = vsel %vm1528_vm0, %v2330_v2, %v2335_v56  ;;  %v1530_v8 = vsel %vm1528_vm0, %v2331_v63, %v2336_v54  ;;  %v2399_v47 = vpop.permute.xlu0 %2398 }
 0x761   :  { %v1638_v9 = vpack.c.bf16 %v1534_v5, %v1533_v6  ;;  %v2344_v27 = vpop.permute.xlu1 %2343  ;;  %v1639_v11 = vpack.c.bf16 %v1530_v8, %v1529_v1  ;;  %v2376_v54 = vunpack.i.h.bf16 %v2374_v15  ;;  %v2375_v56 = vunpack.i.l.bf16 %v2374_v15 }
 0x762   :  { %v2346_v7 = vunpack.i.h.bf16 %v2344_v27  ;;  %v2345_v16 = vunpack.i.l.bf16 %v2344_v27  ;;  %v2395_v1 = vunpack.i.l.bf16 %v2394_v53  ;;  %v2401_v15 = vunpack.i.h.bf16 %v2399_v47 }
 0x763   :  { %1680 = vmatprep.subr.bf16.mxu0 %v1639_v11  ;;  %v2400_v0 = vunpack.i.l.bf16 %v2399_v47 }
 0x764   :  { %v1536_v19 = vsel %vm1528_vm0, %v2341_v3, %v2346_v7  ;;  %v1535_v20 = vsel %vm1528_vm0, %v2340_v4, %v2345_v16  ;;  %1681 = vmatpush1.bf16.msra.mxu0 %v1638_v9  ;;  %v1531_v21 = vsel %vm1528_vm0, %v2345_v16, %v2340_v4  ;;  %v1532_v58 = vsel %vm1528_vm0, %v2346_v7, %v2341_v3  ;;  %v2414_v27 = vpop.permute.xlu0 %2413 }
 0x765   :  { %v1640_v24 = vpack.c.bf16 %v1536_v19, %v1535_v20  ;;  %v2349_v17 = vpop.permute.xlu1 %2348  ;;  %v1641_v22 = vpack.c.bf16 %v1532_v58, %v1531_v21  ;;  %v2396_v4 = vunpack.i.h.bf16 %v2394_v53  ;;  %v2416_v58 = vunpack.i.h.bf16 %v2414_v27 }
 0x766   :  { %v2351_v29 = vunpack.i.h.bf16 %v2349_v17  ;;  %v2350_v30 = vunpack.i.l.bf16 %v2349_v17 }
 0x767   :  { %1682 = vmatprep.subr.bf16.mxu0 %v1641_v22  ;;  %v2415_v22 = vunpack.i.l.bf16 %v2414_v27 }
 0x768   :  { %v1558_v35 = vsel %vm1311_vm10, %v2356_v18, %v2351_v29  ;;  %v1557_v37 = vsel %vm1311_vm10, %v2355_v10, %v2350_v30  ;;  %1683 = vmatpush1.bf16.msra.mxu0 %v1640_v24  ;;  %v1553_v38 = vsel %vm1311_vm10, %v2350_v30, %v2355_v10  ;;  %v1554_v41 = vsel %vm1311_vm10, %v2351_v29, %v2356_v18  ;;  %v2424_v29 = vpop.permute.xlu0 %2423 }
 0x769   :  { %v1642_v43 = vpack.c.bf16 %v1558_v35, %v1557_v37  ;;  %v2359_v44 = vpop.permute.xlu1 %2358  ;;  %v1643_v33 = vpack.c.bf16 %v1554_v41, %v1553_v38  ;;  %v2426_v41 = vunpack.i.h.bf16 %v2424_v29 }
 0x76a   :  { %v2361_v46 = vunpack.i.h.bf16 %v2359_v44  ;;  %v2360_v13 = vunpack.i.l.bf16 %v2359_v44 }
 0x76b   :  { %1684 = vmatprep.subr.bf16.mxu0 %v1643_v33  ;;  %v2425_v33 = vunpack.i.l.bf16 %v2424_v29 }
 0x76c   :  { %v1560_v48 = vsel %vm1311_vm10, %v2366_v31, %v2361_v46  ;;  %v1559_v39 = vsel %vm1311_vm10, %v2365_v32, %v2360_v13  ;;  %1685 = vmatpush1.bf16.msra.mxu0 %v1642_v43  ;;  %v1555_v40 = vsel %vm1311_vm10, %v2360_v13, %v2365_v32  ;;  %v1556_v42 = vsel %vm1311_vm10, %v2361_v46, %v2366_v31 }
 0x76d   :  { %v1644_v49 = vpack.c.bf16 %v1560_v48, %v1559_v39  ;;  %v2369_v50 = vpop.permute.xlu1 %2368  ;;  %v1645_v52 = vpack.c.bf16 %v1556_v42, %v1555_v40 }
 0x76e   :  { %v2371_v14 = vunpack.i.h.bf16 %v2369_v50  ;;  %v2370_v57 = vunpack.i.l.bf16 %v2369_v50 }
 0x76f   :  { %1686 = vmatprep.subr.bf16.mxu0 %v1645_v52 }
 0x770   :  { %1687 = vmatpush1.bf16.msra.mxu0 %v1644_v49  ;;  %v1581_v63 = vsel %vm1336_vm11, %v2375_v56, %v2370_v57  ;;  %v1582_v2 = vsel %vm1336_vm11, %v2376_v54, %v2371_v14  ;;  %v1578_v5 = vsel %vm1336_vm11, %v2371_v14, %v2376_v54  ;;  %v1577_v6 = vsel %vm1336_vm11, %v2370_v57, %v2375_v56 }
 0x771   :  { %v2384_v59 = vpop.permute.xlu1 %2383  ;;  %1688 = vmatprep.subr.bf16.mxu0 %v2464_v55  ;;  %v1651_v8 = vpack.c.bf16 %v1582_v2, %v1581_v63  ;;  %v1650_v11 = vpack.c.bf16 %v1578_v5, %v1577_v6 }
 0x772   :  { %v2386_v60 = vunpack.i.h.bf16 %v2384_v59  ;;  %v2385_v61 = vunpack.i.l.bf16 %v2384_v59 }
 0x774   :  { %1689 = vmatpush1.bf16.msra.mxu0 %v1646_v23  ;;  %v1583_v23 = vsel %vm1336_vm11, %v2380_v45, %v2385_v61  ;;  %v1580_v7 = vsel %vm1336_vm11, %v2386_v60, %v2381_v62  ;;  %v1579_v25 = vsel %vm1336_vm11, %v2385_v61, %v2380_v45  ;;  %v1883_v45 = vcombine.low %v3245_v28, %v3245_v28 }
 0x775   :  { %v2389_v3 = vpop.permute.xlu1 %2388  ;;  %1690 = vmatprep.subr.bf16.mxu0 %v2464_v55  ;;  %v1584_v55 = vsel %vm1336_vm11, %v2381_v62, %v2386_v60  ;;  %v1652_v21 = vpack.c.bf16 %v1580_v7, %v1579_v25 }
 0x776   :  { %v2391_v36 = vunpack.i.h.bf16 %v2389_v3  ;;  %v2390_v12 = vunpack.i.l.bf16 %v2389_v3 }
 0x778   :  { %1691 = vmatpush1.bf16.msra.mxu0 %v1648_v26  ;;  %v1653_v26 = vpack.c.bf16 %v1584_v55, %v1583_v23  ;;  %v1606_v10 = vsel %vm1601_vm1, %v2395_v1, %v2390_v12  ;;  %v1607_v19 = vsel %vm1601_vm1, %v2396_v4, %v2391_v36  ;;  %v1603_v24 = vsel %vm1601_vm1, %v2391_v36, %v2396_v4 }
 0x779   :  { %v2404_v9 = vpop.permute.xlu1 %2403  ;;  %1692 = vmatprep.subr.bf16.mxu0 %v1651_v8  ;;  %v1602_v17 = vsel %vm1601_vm1, %v2390_v12, %v2395_v1  ;;  %v1655_v30 = vpack.c.bf16 %v1607_v19, %v1606_v10 }
 0x77a   :  { %v2406_v16 = vunpack.i.h.bf16 %v2404_v9  ;;  %v2405_v18 = vunpack.i.l.bf16 %v2404_v9  ;;  %v1654_v38 = vpack.c.bf16 %v1603_v24, %v1602_v17 }
 0x77c   :  { %1693 = vmatpush1.bf16.msra.mxu0 %v1650_v11  ;;  %v1608_v34 = vsel %vm1601_vm1, %v2400_v0, %v2405_v18  ;;  %v1609_v35 = vsel %vm1601_vm1, %v2401_v15, %v2406_v16  ;;  %v1605_v43 = vsel %vm1601_vm1, %v2406_v16, %v2401_v15  ;;  %v1604_v44 = vsel %vm1601_vm1, %v2405_v18, %v2400_v0 }
 0x77d   :  { %v2409_v20 = vpop.permute.xlu1 %2408  ;;  %1694 = vmatprep.subr.bf16.mxu0 %v1653_v26  ;;  %v1657_v46 = vpack.c.bf16 %v1609_v35, %v1608_v34  ;;  %v1656_v42 = vpack.c.bf16 %v1605_v43, %v1604_v44 }
 0x77e   :  { %v2411_v31 = vunpack.i.h.bf16 %v2409_v20  ;;  %v2410_v32 = vunpack.i.l.bf16 %v2409_v20 }
 0x780   :  { %1695 = vmatpush1.bf16.msra.mxu0 %v1652_v21  ;;  %v1630_v39 = vsel %vm1144_vm4, %v2415_v22, %v2410_v32  ;;  %v1631_v40 = vsel %vm1144_vm4, %v2416_v58, %v2411_v31  ;;  %v1627_v49 = vsel %vm1144_vm4, %v2411_v31, %v2416_v58  ;;  %v1626_v50 = vsel %vm1144_vm4, %v2410_v32, %v2415_v22 }
 0x781   :  { %v2419_v37 = vpop.permute.xlu1 %2418  ;;  %1696 = vmatprep.subr.bf16.mxu0 %v1655_v30  ;;  %v1659_v52 = vpack.c.bf16 %v1631_v40, %v1630_v39  ;;  %v1658_v56 = vpack.c.bf16 %v1627_v49, %v1626_v50 }
 0x782   :  { %v2421_v13 = vunpack.i.h.bf16 %v2419_v37  ;;  %v2420_v48 = vunpack.i.l.bf16 %v2419_v37 }
 0x784   :  { %1697 = vmatpush1.bf16.msra.mxu0 %v1654_v38  ;;  %v1632_v53 = vsel %vm1144_vm4, %v2425_v33, %v2420_v48  ;;  %v1633_v54 = vsel %vm1144_vm4, %v2426_v41, %v2421_v13  ;;  %v1629_v14 = vsel %vm1144_vm4, %v2421_v13, %v2426_v41  ;;  %v1628_v57 = vsel %vm1144_vm4, %v2420_v48, %v2425_v33 }
 0x785   :  { %1698 = vmatprep.subr.bf16.mxu0 %v1657_v46  ;;  %v1661_v59 = vpack.c.bf16 %v1633_v54, %v1632_v53  ;;  %v1660_v62 = vpack.c.bf16 %v1629_v14, %v1628_v57 }
 0x788   :  { %1699 = vmatpush1.bf16.msra.mxu0 %v1656_v42 }
 0x789   :  { %1700 = vmatprep.subr.bf16.mxu0 %v1659_v52 }
 0x78c   :  { %1701 = vmatpush1.bf16.msra.mxu0 %v1658_v56 }
 0x78d   :  { %1702 = vmatprep.subr.bf16.mxu0 %v1661_v59 }
 0x790   :  { %1703 = vmatpush1.bf16.msra.mxu0 %v1660_v62 }
 0x792   :  { %v1665_v47 = vpop.permute.xlu1 %1664 }
 0x793   :  { %1709 = vmatmul.mubr.bf16.vlgmr.msra.gmra.mrb[28].mxu0 %v1883_v45 }
 0x866   :  { %v1710_v60 = vpop.f32.mrb[28].mxu0 }
 0x867   :  { %v1711_v61 = vadd.f32 %v1710_v60, %v1665_v47  ;;  %v1712_v63 = vpop.f32.mrb[29].mxu0 }
 0x868   :  { %v1714_v2 = vpop.f32.mrb[30].mxu0 }
 0x869   :  { %2453 = vtanh.f32 %v1711_v61  ;;  %v1715_v3 = vpop.f32.mrb[31].mxu0 }
 0x873   :  { %v2454_v4 = vpop.eup %2453 }
 0x874   :  { %v1719_v5 = vsel %vm1061_vm15, %v2454_v4, 0.0 }
 0x875   :  { %1721 = vst [vmem:[%s3379_s12] sm:$0xff] %v1719_v5 }

</bundles_post_ra>
